<compile_context>
chip_gen: v7x
topology: tpu7x:2x2x1
jax: 0.10.0
libtpu: 0.0.40
codegen_flags: <defaults>
</compile_context>

<pallas_src>
import functools

import jax
import jax.numpy as jnp
from jax import lax
from jax.experimental import pallas as pl
from jax.experimental.pallas import tpu as pltpu


def _fcuup3d_kernel(x_ref, w_ref, shift_ref, rep_ref, o_ref, *,
                    dt_block, hw, hwo, up_stride):
    """One (batch, depth-chunk) grid step.

    x_ref:     (1, Dt*HW, C_in)          bf16 tokens of Dt depth slices
    w_ref:     (C_in, C_out)             bf16 conv weight with BN scale folded in
    shift_ref: (1, C_out)                f32  folded conv-bias / BN shift
    rep_ref:   (HW, Ho*Wo)               bf16 0/1 nearest-upsample replication matrix
    o_ref:     (1, C_out, 1, Dt*s*Ho*Wo) lane-dense collapsed output block
    """
    # 1x1x1 conv over all Dt depth slices at once: bf16 MXU, fp32 accumulation.
    x = x_ref[0]                                                        # (Dt*HW, Cin)
    z = jnp.dot(x, w_ref[...], preferred_element_type=jnp.float32)      # (Dt*HW, Cout)
    # Folded conv-bias/BN shift + ReLU; bf16 for the replication matmul.
    y = jnp.maximum(z + shift_ref[...], 0.0).astype(jnp.bfloat16)       # (Dt*HW, Cout)

    rep = rep_ref[...]                                                  # (HW, Ho*Wo)
    for dt in range(dt_block):                                          # static, small
        y_dt = y[dt * hw:(dt + 1) * hw, :]                              # (HW, Cout)
        # Fused transpose + (h, w) nearest upsample: contract the token axis
        # against the constant 0/1 replication matrix -> channel-major rows that
        # are lane-dense over Ho*Wo.
        cw = lax.dot_general(y_dt, rep,
                             dimension_numbers=(((0,), (0,)), ((), ())),
                             preferred_element_type=jnp.float32)        # (Cout, Ho*Wo)
        cw = cw.astype(o_ref.dtype)
        # Nearest upsample along D: s contiguous Ho*Wo-wide stores at static
        # offsets of the collapsed last output axis (depths (g*Dt+dt)*s + sd).
        for sd in range(up_stride):
            start = (dt * up_stride + sd) * hwo                         # static offset
            o_ref[0, :, 0, start:start + hwo] = cw


def _choose_depth_tile(D, HW, C_in, C_out, s, out_bytes,
                       row_target=512, vmem_budget=24 << 20):
    """Largest divisor Dt of D such that the conv matmul gets ~row_target rows
    while the double-buffered x/out blocks stay within a VMEM budget."""
    best = 1
    for dt in range(1, D + 1):
        if D % dt:
            continue
        # Keep the second-minor block dim sublane-aligned (or the full extent).
        if (dt * HW) % 8 and dt != D:
            continue
        x_blk = dt * HW * C_in * 2                       # bf16 input block
        o_blk = C_out * dt * (s ** 3) * HW * out_bytes   # output block
        if dt > 1 and 2 * (x_blk + o_blk) > vmem_budget:
            break
        best = dt
        if dt * HW >= row_target:
            break
    return best


def fcuup3d_forward(x, w_proj_t, b_proj, bn_gamma, bn_beta, bn_mean, bn_var,
                    *, D, H, W, up_stride, eps=1e-6, out_dtype=jnp.float32):
    """x: (B, 1 + D*H*W, C_in); w_proj_t: (C_in, C_out) (transposed conv weight);
    b_proj / bn_*: (C_out,).  Returns (B, C_out, D*s, H*s, W*s) in out_dtype."""
    B, N, C_in = x.shape
    assert N == 1 + D * H * W, "token count must be 1 + D*H*W (cls token first)"
    C_out = w_proj_t.shape[1]
    s = int(up_stride)
    HW = H * W
    Ho, Wo = H * s, W * s
    HoWo = Ho * Wo
    out_bytes = jnp.dtype(out_dtype).itemsize

    # Fold the 1x1x1-conv bias + inference-mode BatchNorm3d into the conv weight
    # (per-channel scale) and a per-channel shift, so the in-kernel epilogue is
    # just "+ shift, ReLU".
    inv_std = 1.0 / jnp.sqrt(bn_var.astype(jnp.float32) + eps)
    scale = bn_gamma.astype(jnp.float32) * inv_std                        # (C_out,)
    shift = (bn_beta.astype(jnp.float32)
             + scale * (b_proj.astype(jnp.float32) - bn_mean.astype(jnp.float32))
             ).reshape(1, C_out)
    w_fold = (w_proj_t.astype(jnp.float32) * scale[None, :]).astype(jnp.bfloat16)

    # Drop the cls token; bf16 MXU operands.
    # TODO(synk): this slice+cast prepass could be removed by passing raw x with
    # memory_space=pl.ANY and manually DMAing x[b, 1 + g*Dt*HW : ...] (the +1 cls
    # offset is not expressible in a blocked index_map).
    x_tok = x[:, 1:, :].astype(jnp.bfloat16)                              # (B, D*HW, Cin)

    # 0/1 replication matrix (bf16 is exact on 0/1): token (h, w) feeds output
    # pixel (ho, wo) iff ho // s == h and wo // s == w (nearest interpolation).
    hw_i = jnp.arange(HW)
    h_idx, w_idx = hw_i // W, hw_i % W
    howo = jnp.arange(HoWo)
    ho_idx, wo_idx = howo // Wo, howo % Wo
    rep = ((h_idx[:, None] == ho_idx[None, :] // s)
           & (w_idx[:, None] == wo_idx[None, :] // s)).astype(jnp.bfloat16)
    # TODO(synk): for very large H*W (rep above ~16 MB even in bf16) add a third
    # grid axis tiling the Ho*Wo columns of rep to bound VMEM on v7x (64 MiB).

    Dt = _choose_depth_tile(D, HW, C_in, C_out, s, out_bytes)
    n_dblk = D // Dt

    # Derived VMEM budget: double-buffered x/out blocks + resident constants.
    x_blk = Dt * HW * C_in * 2
    o_blk = C_out * Dt * s * HoWo * out_bytes
    const_b = C_in * C_out * 2 + C_out * 4 + HW * HoWo * 2
    vmem_limit = int(min(128 << 20,
                         max(32 << 20, 2 * (x_blk + o_blk + const_b) + (8 << 20))))

    out4 = pl.pallas_call(
        functools.partial(_fcuup3d_kernel,
                          dt_block=Dt, hw=HW, hwo=HoWo, up_stride=s),
        out_shape=jax.ShapeDtypeStruct((B, C_out, n_dblk, Dt * s * HoWo), out_dtype),
        grid_spec=pltpu.PrefetchScalarGridSpec(
            num_scalar_prefetch=0,
            grid=(B, n_dblk),
            in_specs=[
                pl.BlockSpec((1, Dt * HW, C_in), lambda b, g: (b, g, 0)),
                # Constant index maps: weight / shift / replication matrix stay
                # VMEM-resident across all grid steps (no re-DMA).
                pl.BlockSpec((C_in, C_out), lambda b, g: (0, 0)),
                pl.BlockSpec((1, C_out), lambda b, g: (0, 0)),
                pl.BlockSpec((HW, HoWo), lambda b, g: (0, 0)),
            ],
            out_specs=pl.BlockSpec((1, C_out, 1, Dt * s * HoWo),
                                   lambda b, g: (b, 0, g, 0)),
        ),
        compiler_params=pltpu.CompilerParams(
            dimension_semantics=("parallel", "parallel"),
            vmem_limit_bytes=vmem_limit,
        ),
    )(x_tok, w_fold, shift, rep)

    # Free (contiguous) reshape:
    # (B, C_out, D/Dt, Dt*s*Ho*Wo) == (B, C_out, D*s, Ho, Wo) element-for-element,
    # since the last axis is ordered (dt, sd, ho, wo) and do = (g*Dt + dt)*s + sd.
    return out4.reshape(B, C_out, D * s, Ho, Wo)


def fcuup3d_reference(x, w_proj_t, b_proj, bn_gamma, bn_beta, bn_mean, bn_var,
                      *, D, H, W, up_stride, eps=1e-6):
    """Pure-JAX reference mirroring the PyTorch forward (inference-mode BN) with
    the same precision policy as the kernel (bf16 MXU operands, f32 accumulation,
    bf16 pass through the replication step)."""
    B, N, C_in = x.shape
    C_out = w_proj_t.shape[1]
    s = up_stride
    scale = bn_gamma / jnp.sqrt(bn_var + eps)
    shift = bn_beta + scale * (b_proj - bn_mean)
    w_fold = (w_proj_t * scale[None, :]).astype(jnp.bfloat16)
    xt = x[:, 1:, :].astype(jnp.bfloat16)                                # (B, L, Cin)
    z = jnp.dot(xt, w_fold, preferred_element_type=jnp.float32)          # (B, L, Cout)
    y = jnp.maximum(z + shift, 0.0)
    y = y.astype(jnp.bfloat16).astype(jnp.float32)        # mirror kernel's rep matmul
    y = y.reshape(B, D, H, W, C_out).transpose(0, 4, 1, 2, 3)            # (B,Cout,D,H,W)
    y = jnp.repeat(jnp.repeat(jnp.repeat(y, s, axis=2), s, axis=3), s, axis=4)
    return y.astype(jnp.float32)


if __name__ == "__main__":
    B, C_in, C_out = 2, 32, 32          # inplanes, outplanes
    D = H = W = 4
    up_stride = 2
    N = 1 + D * H * W                   # 65 tokens (cls + D*H*W)

    key = jax.random.PRNGKey(0)
    kx, kw, kb, kg, kbe, km, kv = jax.random.split(key, 7)

    x = jax.random.normal(kx, (B, N, C_in), dtype=jnp.float32)
    # PyTorch Conv3d weight is (out, in, 1, 1, 1); we store the transposed 2-D
    # view (in, out) so the kernel computes y = x @ W_t (+ folded bias).
    w_proj_t = jax.random.normal(kw, (C_in, C_out), dtype=jnp.float32) * 0.05
    b_proj = jax.random.normal(kb, (C_out,), dtype=jnp.float32) * 0.05
    bn_gamma = 1.0 + 0.1 * jax.random.normal(kg, (C_out,), dtype=jnp.float32)
    bn_beta = 0.1 * jax.random.normal(kbe, (C_out,), dtype=jnp.float32)
    bn_mean = 0.1 * jax.random.normal(km, (C_out,), dtype=jnp.float32)
    bn_var = 1.0 + jax.random.uniform(kv, (C_out,), dtype=jnp.float32)

    out = fcuup3d_forward(x, w_proj_t, b_proj, bn_gamma, bn_beta, bn_mean, bn_var,
                          D=D, H=H, W=W, up_stride=up_stride)
    out = jax.block_until_ready(out)

    ref = fcuup3d_reference(x, w_proj_t, b_proj, bn_gamma, bn_beta, bn_mean, bn_var,
                            D=D, H=H, W=W, up_stride=up_stride)
    assert out.shape == (B, C_out, D * up_stride, H * up_stride, W * up_stride)
    assert jnp.allclose(out, ref, atol=1e-2, rtol=1e-2), "mismatch vs reference"

    print("KERNEL_OK")
</pallas_src>

<mosaic_0001>
module attributes {stable_mosaic.version = 11 : i64} {
  func.func @_fcuup3d_kernel(%arg0: i32, %arg1: i32, %arg2: memref<1x64x32xbf16, #tpu.memory_space<vmem>>, %arg3: memref<32x32xbf16, #tpu.memory_space<vmem>>, %arg4: memref<1x32xf32, #tpu.memory_space<vmem>>, %arg5: memref<16x64xbf16, #tpu.memory_space<vmem>>, %arg6: memref<1x32x1x512xf32, #tpu.memory_space<vmem>>) attributes {dimension_semantics = [#tpu.dimension_semantics<parallel>, #tpu.dimension_semantics<parallel>], iteration_bounds = array<i64: 2, 1>, scalar_prefetch = 0 : i64, scratch_operands = 0 : i64, tpu.core_type = #tpu.core_type<tc>, window_params = [{transform_indices = @transform_0, window_bounds = array<i64: 1, 64, 32>}, {pipeline_mode = #tpu.pipeline_mode<synchronous>, transform_indices = @transform_1, window_bounds = array<i64: 32, 32>}, {pipeline_mode = #tpu.pipeline_mode<synchronous>, transform_indices = @transform_2, window_bounds = array<i64: 1, 32>}, {pipeline_mode = #tpu.pipeline_mode<synchronous>, transform_indices = @transform_3, window_bounds = array<i64: 16, 64>}, {transform_indices = @transform_4, window_bounds = array<i64: 1, 32, 1, 512>}]} {
    %c0 = arith.constant 0 : index
    %c0_0 = arith.constant 0 : index
    %c0_1 = arith.constant 0 : index
    %0 = vector.load %arg2[%c0, %c0_0, %c0_1] : memref<1x64x32xbf16, #tpu.memory_space<vmem>>, vector<1x64x32xbf16>
    %1 = vector.shape_cast %0 : vector<1x64x32xbf16> to vector<64x32xbf16>
    %c0_2 = arith.constant 0 : index
    %c0_3 = arith.constant 0 : index
    %2 = vector.load %arg3[%c0_2, %c0_3] : memref<32x32xbf16, #tpu.memory_space<vmem>>, vector<32x32xbf16>
    %cst = arith.constant dense<0.000000e+00> : vector<64x32xf32>
    %3 = tpu.matmul %1, %2, %cst {dimension_numbers = #tpu.dot_dimension_numbers<[1], [0], [0], [1], [0, 0, 1, 1], [], []>} : vector<64x32xbf16>, vector<32x32xbf16>, vector<64x32xf32> -> vector<64x32xf32>
    %c0_4 = arith.constant 0 : index
    %c0_5 = arith.constant 0 : index
    %4 = vector.load %arg4[%c0_4, %c0_5] : memref<1x32xf32, #tpu.memory_space<vmem>>, vector<1x32xf32>
    %5 = vector.broadcast %4 : vector<1x32xf32> to vector<64x32xf32>
    %6 = arith.addf %3, %5 : vector<64x32xf32>
    %cst_6 = arith.constant 0.000000e+00 : f32
    %7 = vector.broadcast %cst_6 : f32 to vector<64x32xf32>
    %8 = arith.maximumf %6, %7 : vector<64x32xf32>
    %9 = arith.truncf %8 : vector<64x32xf32> to vector<64x32xbf16>
    %c0_7 = arith.constant 0 : index
    %c0_8 = arith.constant 0 : index
    %10 = vector.load %arg5[%c0_7, %c0_8] : memref<16x64xbf16, #tpu.memory_space<vmem>>, vector<16x64xbf16>
    %11 = vector.extract_strided_slice %9 {offsets = [0, 0], sizes = [16, 32], strides = [1, 1]} : vector<64x32xbf16> to vector<16x32xbf16>
    %cst_9 = arith.constant dense<0.000000e+00> : vector<32x64xf32>
    %12 = tpu.matmul %11, %10, %cst_9 {dimension_numbers = #tpu.dot_dimension_numbers<[0], [0], [1], [1], [0, 1, 1, 1], [], []>} : vector<16x32xbf16>, vector<16x64xbf16>, vector<32x64xf32> -> vector<32x64xf32>
    %c0_10 = arith.constant 0 : index
    %c0_11 = arith.constant 0 : index
    %c0_12 = arith.constant 0 : index
    %c0_13 = arith.constant 0 : index
    %13 = vector.load %arg6[%c0_10, %c0_11, %c0_12, %c0_13] : memref<1x32x1x512xf32, #tpu.memory_space<vmem>>, vector<1x32x1x64xf32>
    %14 = vector.shape_cast %13 : vector<1x32x1x64xf32> to vector<32x64xf32>
    %15 = vector.shape_cast %12 : vector<32x64xf32> to vector<1x32x1x64xf32>
    tpu.vector_store %arg6[%c0_10, %c0_11, %c0_12, %c0_13], %15 {strides = array<i32>} : memref<1x32x1x512xf32, #tpu.memory_space<vmem>>, vector<1x32x1x64xf32>,
    %c0_14 = arith.constant 0 : index
    %c0_15 = arith.constant 0 : index
    %c0_16 = arith.constant 0 : index
    %c64 = arith.constant 64 : index
    %16 = vector.load %arg6[%c0_14, %c0_15, %c0_16, %c64] : memref<1x32x1x512xf32, #tpu.memory_space<vmem>>, vector<1x32x1x64xf32>
    %17 = vector.shape_cast %16 : vector<1x32x1x64xf32> to vector<32x64xf32>
    %18 = vector.shape_cast %12 : vector<32x64xf32> to vector<1x32x1x64xf32>
    tpu.vector_store %arg6[%c0_14, %c0_15, %c0_16, %c64], %18 {strides = array<i32>} : memref<1x32x1x512xf32, #tpu.memory_space<vmem>>, vector<1x32x1x64xf32>,
    %19 = vector.extract_strided_slice %9 {offsets = [16, 0], sizes = [16, 32], strides = [1, 1]} : vector<64x32xbf16> to vector<16x32xbf16>
    %cst_17 = arith.constant dense<0.000000e+00> : vector<32x64xf32>
    %20 = tpu.matmul %19, %10, %cst_17 {dimension_numbers = #tpu.dot_dimension_numbers<[0], [0], [1], [1], [0, 1, 1, 1], [], []>} : vector<16x32xbf16>, vector<16x64xbf16>, vector<32x64xf32> -> vector<32x64xf32>
    %c0_18 = arith.constant 0 : index
    %c0_19 = arith.constant 0 : index
    %c0_20 = arith.constant 0 : index
    %c128 = arith.constant 128 : index
    %21 = vector.load %arg6[%c0_18, %c0_19, %c0_20, %c128] : memref<1x32x1x512xf32, #tpu.memory_space<vmem>>, vector<1x32x1x64xf32>
    %22 = vector.shape_cast %21 : vector<1x32x1x64xf32> to vector<32x64xf32>
    %23 = vector.shape_cast %20 : vector<32x64xf32> to vector<1x32x1x64xf32>
    tpu.vector_store %arg6[%c0_18, %c0_19, %c0_20, %c128], %23 {strides = array<i32>} : memref<1x32x1x512xf32, #tpu.memory_space<vmem>>, vector<1x32x1x64xf32>,
    %c0_21 = arith.constant 0 : index
    %c0_22 = arith.constant 0 : index
    %c0_23 = arith.constant 0 : index
    %c192 = arith.constant 192 : index
    %24 = vector.load %arg6[%c0_21, %c0_22, %c0_23, %c192] : memref<1x32x1x512xf32, #tpu.memory_space<vmem>>, vector<1x32x1x64xf32>
    %25 = vector.shape_cast %24 : vector<1x32x1x64xf32> to vector<32x64xf32>
    %26 = vector.shape_cast %20 : vector<32x64xf32> to vector<1x32x1x64xf32>
    tpu.vector_store %arg6[%c0_21, %c0_22, %c0_23, %c192], %26 {strides = array<i32>} : memref<1x32x1x512xf32, #tpu.memory_space<vmem>>, vector<1x32x1x64xf32>,
    %27 = vector.extract_strided_slice %9 {offsets = [32, 0], sizes = [16, 32], strides = [1, 1]} : vector<64x32xbf16> to vector<16x32xbf16>
    %cst_24 = arith.constant dense<0.000000e+00> : vector<32x64xf32>
    %28 = tpu.matmul %27, %10, %cst_24 {dimension_numbers = #tpu.dot_dimension_numbers<[0], [0], [1], [1], [0, 1, 1, 1], [], []>} : vector<16x32xbf16>, vector<16x64xbf16>, vector<32x64xf32> -> vector<32x64xf32>
    %c0_25 = arith.constant 0 : index
    %c0_26 = arith.constant 0 : index
    %c0_27 = arith.constant 0 : index
    %c256 = arith.constant 256 : index
    %29 = vector.load %arg6[%c0_25, %c0_26, %c0_27, %c256] : memref<1x32x1x512xf32, #tpu.memory_space<vmem>>, vector<1x32x1x64xf32>
    %30 = vector.shape_cast %29 : vector<1x32x1x64xf32> to vector<32x64xf32>
    %31 = vector.shape_cast %28 : vector<32x64xf32> to vector<1x32x1x64xf32>
    tpu.vector_store %arg6[%c0_25, %c0_26, %c0_27, %c256], %31 {strides = array<i32>} : memref<1x32x1x512xf32, #tpu.memory_space<vmem>>, vector<1x32x1x64xf32>,
    %c0_28 = arith.constant 0 : index
    %c0_29 = arith.constant 0 : index
    %c0_30 = arith.constant 0 : index
    %c320 = arith.constant 320 : index
    %32 = vector.load %arg6[%c0_28, %c0_29, %c0_30, %c320] : memref<1x32x1x512xf32, #tpu.memory_space<vmem>>, vector<1x32x1x64xf32>
    %33 = vector.shape_cast %32 : vector<1x32x1x64xf32> to vector<32x64xf32>
    %34 = vector.shape_cast %28 : vector<32x64xf32> to vector<1x32x1x64xf32>
    tpu.vector_store %arg6[%c0_28, %c0_29, %c0_30, %c320], %34 {strides = array<i32>} : memref<1x32x1x512xf32, #tpu.memory_space<vmem>>, vector<1x32x1x64xf32>,
    %35 = vector.extract_strided_slice %9 {offsets = [48, 0], sizes = [16, 32], strides = [1, 1]} : vector<64x32xbf16> to vector<16x32xbf16>
    %cst_31 = arith.constant dense<0.000000e+00> : vector<32x64xf32>
    %36 = tpu.matmul %35, %10, %cst_31 {dimension_numbers = #tpu.dot_dimension_numbers<[0], [0], [1], [1], [0, 1, 1, 1], [], []>} : vector<16x32xbf16>, vector<16x64xbf16>, vector<32x64xf32> -> vector<32x64xf32>
    %c0_32 = arith.constant 0 : index
    %c0_33 = arith.constant 0 : index
    %c0_34 = arith.constant 0 : index
    %c384 = arith.constant 384 : index
    %37 = vector.load %arg6[%c0_32, %c0_33, %c0_34, %c384] : memref<1x32x1x512xf32, #tpu.memory_space<vmem>>, vector<1x32x1x64xf32>
    %38 = vector.shape_cast %37 : vector<1x32x1x64xf32> to vector<32x64xf32>
    %39 = vector.shape_cast %36 : vector<32x64xf32> to vector<1x32x1x64xf32>
    tpu.vector_store %arg6[%c0_32, %c0_33, %c0_34, %c384], %39 {strides = array<i32>} : memref<1x32x1x512xf32, #tpu.memory_space<vmem>>, vector<1x32x1x64xf32>,
    %c0_35 = arith.constant 0 : index
    %c0_36 = arith.constant 0 : index
    %c0_37 = arith.constant 0 : index
    %c448 = arith.constant 448 : index
    %40 = vector.load %arg6[%c0_35, %c0_36, %c0_37, %c448] : memref<1x32x1x512xf32, #tpu.memory_space<vmem>>, vector<1x32x1x64xf32>
    %41 = vector.shape_cast %40 : vector<1x32x1x64xf32> to vector<32x64xf32>
    %42 = vector.shape_cast %36 : vector<32x64xf32> to vector<1x32x1x64xf32>
    tpu.vector_store %arg6[%c0_35, %c0_36, %c0_37, %c448], %42 {strides = array<i32>} : memref<1x32x1x512xf32, #tpu.memory_space<vmem>>, vector<1x32x1x64xf32>,
    return
  }
  func.func @transform_0(%arg0: i32, %arg1: i32) -> (i32, i32, i32) {
    %c0_i32 = arith.constant 0 : i32
    %c0_i32_0 = arith.constant 0 : i32
    return %arg0, %arg1, %c0_i32 : i32, i32, i32
  }
  func.func @transform_1(%arg0: i32, %arg1: i32) -> (i32, i32) {
    %c0_i32 = arith.constant 0 : i32
    %c0_i32_0 = arith.constant 0 : i32
    %c0_i32_1 = arith.constant 0 : i32
    return %c0_i32, %c0_i32_0 : i32, i32
  }
  func.func @transform_2(%arg0: i32, %arg1: i32) -> (i32, i32) {
    %c0_i32 = arith.constant 0 : i32
    %c0_i32_0 = arith.constant 0 : i32
    %c0_i32_1 = arith.constant 0 : i32
    return %c0_i32, %c0_i32_0 : i32, i32
  }
  func.func @transform_3(%arg0: i32, %arg1: i32) -> (i32, i32) {
    %c0_i32 = arith.constant 0 : i32
    %c0_i32_0 = arith.constant 0 : i32
    %c0_i32_1 = arith.constant 0 : i32
    return %c0_i32, %c0_i32_0 : i32, i32
  }
  func.func @transform_4(%arg0: i32, %arg1: i32) -> (i32, i32, i32, i32) {
    %c0_i32 = arith.constant 0 : i32
    %c0_i32_0 = arith.constant 0 : i32
    %c0_i32_1 = arith.constant 0 : i32
    return %arg0, %c0_i32, %arg1, %c0_i32_0 : i32, i32, i32, i32
  }
}

</mosaic_0001>

<bundles_post_ra>
// kernel: tpu_custom_call.1
= control target key start
LH: loop header
LB: loop body
LE: loop exit
PB: predicated region body
PF: predicated region fallthrough
CT: control target
= control target key end

     0   :  { %9 = vsyncpa [#allocation3], 0  ;;  %s4490_s0 = inlined_call_operand.vmem [shape: bf16[2,64,32], index: 0, kind: input, shape index: {}]   ;;  %s4491_s1 = inlined_call_operand.vmem [shape: bf16[32,32], index: 1, kind: input, shape index: {}]   ;;  %s4492_s2 = inlined_call_operand.vmem [shape: f32[1,32], index: 2, kind: input, shape index: {}]   ;;  %s4493_s3 = inlined_call_operand.vmem [shape: bf16[16,64], index: 3, kind: input, shape index: {}]   ;;  %s4494_s4 = inlined_call_operand.hbm [shape: f32[2,32,1,512], index: 4, kind: output, shape index: {}]  }
   0x1   :  { %11 = vsyncpa [#allocation3 + $0x1], 0  ;;  %s2595_s15 = smov 0   ;;  %s2597_s16 = smov 0  }
   0x2   :  { %s2599_s17 = smov 0   ;;  %s2601_s18 = smov 0  }
   0x3   :  { %s2603_s19 = smov 0   ;;  %s2605_s20 = smov 0  }
   0x4 LB: > { %s2331_s21 = sadd.s32 4294967295, %s2564_s20   ;;  %s2332_s22 = sadd.s32 4294967294, %s2564_s20   ;;  %s2564_s20 = sphi %s2605_s20, %s17_s20   ;;  %s2560_s19 = sphi %s2603_s19, %s4641_s19   ;;  %s2556_s18 = sphi %s2601_s18, %s4640_s18   ;;  %s2552_s17 = sphi %s2599_s17, %s4639_s17   ;;  %s2548_s16 = sphi %s2597_s16, %s4638_s16   ;;  %s2544_s15 = sphi %s2595_s15, %s4637_s15  }
   0x5   : > { %s29_s23 = sadd.s32 1, %s2560_s19  ;;  %s129_s24 = sadd.s32 1, %s2552_s17 }
   0x6   : > { %p31_p0 = scmp.ge.s32.totalorder %s29_s23, 2  ;;  %p139_p1 = scmp.ne.s32.totalorder %s2552_s17, %s2548_s16 }
   0x7   : > { %p140_p2 = scmp.eq.s32.totalorder %s2331_s21, 1  ;;  %p145_p3 = scmp.ne.s32.totalorder %s2548_s16, %s2544_s15 }
   0x8   : > { %s4643_s23 = smov (%p31_p0, %s29_s23), 0  ;;  %p146_p5 = scmp.eq.s32.totalorder %s2332_s22, 1 }
   0x9   : > { %p2635_p4 = por %p140_p2, %p139_p1  ;;  %s124_s26 = ssub.s32 %s2560_s19, %s4643_s23 }
   0xa   : > { %p2335_p6 = scmp.ge.s32.totalorder %s2564_s20, 1  ;;  %p127_p7 = scmp.eq.s32.totalorder %s124_s26, 0 }
   0xb   : > { %p2642_p8 = por %p146_p5, %p145_p3  ;;  %p186_p9 = scmp.lt.s32.totalorder %s2564_s20, 3 }
   0xc   : > { %s2648_s28 = scalar_select %p127_p7, %s2552_s17, %s129_s24  }
   0xd   : > { %p187_p10 = pnand %p2335_p6, %p186_p9 }
   0xf   : > { %190 = sbr.rel (%p187_p10) target bundleno = 964 (0x3c4), region = 36 }
  0x16   : > { %v2479_v0 = vld [vmem:[%s4491_s1] sm:$0xff]   ;;  %p217_p11 = scmp.lt.s32.totalorder %s2556_s18, 1  ;;  %v2480_v1 = vld [vmem:[%s4491_s1 + $0x8] sm:$0xff]   ;;  %vm278_vm0 = vcmask 261120   ;;  %vm392_vm1 = vcmask 130048   ;;  %v4495_v46 = vlaneseq  ;;  %s213_s22 = sand.u32 1, %s2548_s16  }
  0x17   : > { %2384 = vmatprep.subr.bf16.mxu0 %v2479_v0  ;;  %v2485_v6 = vld [vmem:[%s4493_s3] sm:$0xff]   ;;  %v2566_v44 = vmov 1966171168   ;;  %s2336_s24 = sshll.u32 %s213_s22, 7  ;;  %s2567_s26 = smov 64  }
  0x18   : > { %s218_s7 = scalar_select %p217_p11, %s2556_s18, 1  ;;  %2385 = vmatpush3.bf16.msra.mxu0 %v2479_v0  ;;  %2396 = vmatprep.subr.bf16.mxu1 %v2485_v6  ;;  %v2339_v7 = vld [vmem:[%s4492_s2] ss:$0 sm:$0xff]  ;;  %v454_v45 = vunpack.c.l.s4 %v2566_v44  ;;  %v457_v48 = vshrl.u32 %v4495_v46, 7  ;;  %vm2684_vm2 = vcmp.lt.s32.totalorder %v4495_v46, 64 }
  0x19   : > { %2386 = vmatprep.subr.bf16.mxu0 %v2480_v1  ;;  %2397 = vmatpush3.bf16.msra.mxu1 %v2485_v6  ;;  %s2696_s29 = scalar_lea.vmem [#allocation2], %s2336_s24  ;;  %s2365_s30 = sshll.u32 %s2556_s18, 11 }
  0x1a   : > { %s2364_s8 = sshll.u32 %s218_s7, 5  ;;  %2402 = vmatprep.subr.bf16.mxu1 %v2485_v6  ;;  %v455_v47 = vunpack.c.0.s8 %v454_v45  ;;  %s2252_s5 = sshll.u32 %s2696_s29, 4  ;;  %s4435_s5 = int_to_ptr.vmem [resolvable:$true] %s2252_s5 }
  0x1b   : > { %s224_s11 = scalar_lea.vmem %s4490_s0, %s2364_s8  ;;  %s4433_s8 = scalar_lea.hbm %s4494_s4, %s2365_s30 }
  0x1c   : > { %v2481_v2 = vld [vmem:[%s224_s11] sm:$0xff]   ;;  %2387 = vmatpush3.bf16.msra.mxu0 %v2480_v1  ;;  %v2482_v3 = vld [vmem:[%s224_s11 + $0x8] sm:$0xff]   ;;  %v2483_v4 = vld [vmem:[%s224_s11 + $0x10] sm:$0xff]   ;;  %v2677_v49 = vsub.s32 %v455_v47, %v457_v48  ;;  %s4442_s18 = scalar_lea.sflag [#allocation3], %s213_s22  ;;  %s2486_s9 = scalar_lea.vmem %s4435_s5, 2048 }
  0x1d   : > { %2388 = vmatprep.mubr.msk.bf16.mxu0 %vm278_vm0, %v2481_v2  ;;  %v2484_v5 = vld [vmem:[%s224_s11 + $0x18] sm:$0xff]   ;;  %2414 = vmatprep.subr.bf16.mxu0 %v2485_v6  ;;  %p2487_p12 = scmp.ne.s32.totalorder %s4435_s5, %s2486_s9  ;;  %s2568_s10 = smov [#allocation2]  }
  0x1e   : > { %s2490_s11 = sshll.u32 %s2568_s10, 4  ;;  %s2491_s11 = int_to_ptr.vmem [resolvable:$false] %s2490_s11 }
  0x1f   : > { %2389 = vmatmul.mubr.msk.bf16.vlgmr.msra.gmra.mrb[0].mxu0 %vm278_vm0, %v2482_v3  ;;  %p2488_p13 = pnand %p2487_p12, %p2635_p4  ;;  %s2492_s12 = scalar_lea.vmem %s2491_s11, 4096 }
  0x20   : > { %2392 = vmatprep.mubr.msk.bf16.mxu0 %vm278_vm0, %v2483_v4  ;;  %2415 = vmatpush3.bf16.msra.mxu0 %v2485_v6  ;;  %p2493_p1 = scmp.lt.s32.totalorder %s4435_s5, %s2491_s11  ;;  %p2494_p2 = scmp.lt.s32.totalorder %s2492_s12, %s2486_s9 }
  0x21   : > { %p2489_p0 = pneg %p2488_p13 }
  0x22   : > { %p2495_p3 = por %p2494_p2, %p2493_p1 }
  0x24   : > { %p2496_p5 = pnand %p2495_p3, %p2489_p0 }
  0x27   : > { %2393 = vmatmul.mubr.msk.bf16.gmra.mrb[4].mxu0 %vm278_vm0, %v2484_v5 }
  0xf2   : > { %v2390_v8 = vpop.f32.mrb[0].mxu0 }
  0xf3   : > { %v334_v9 = vadd.f32 %v2390_v8, %v2339_v7  ;;  %v325_v10 = vpop.f32.mrb[1].mxu0 }
  0xf4   : > { %v326_v11 = vadd.f32 %v2339_v7, %v325_v10  ;;  %v2391_v12 = vpop.f32.mrb[2].mxu0 }
  0xf5   : > { %v337_v13 = vadd.f32 %v2391_v12, %v2339_v7  ;;  %v328_v14 = vpop.f32.mrb[3].mxu0  ;;  %v358_v16 = vmax.f32 %v334_v9, 0.0 }
  0xf6   : > { %v329_v15 = vadd.f32 %v2339_v7, %v328_v14  ;;  %v356_v18 = vmax.f32 %v326_v11, 0.0 }
  0xf7   : > { %v359_v17 = vmax.f32 %v337_v13, 0.0 }
  0xf8   : > { %v357_v19 = vmax.f32 %v329_v15, 0.0 }
  0xf9   : > { %v365_v20 = vpack.c.bf16 %v359_v17, %v358_v16 }
  0xfa   : > { %v364_v21 = vpack.c.bf16 %v357_v19, %v356_v18  ;;  %v2394_v22 = vpop.f32.mrb[4].mxu0 }
  0xfb   : > { %v350_v23 = vadd.f32 %v2394_v22, %v2339_v7  ;;  %v341_v24 = vpop.f32.mrb[5].mxu0 }
  0xfc   : > { %370 = vxpose.xlu0.c.b16.start.end [1/1] (short) (narrow) %v364_v21, 32  ;;  %v342_v25 = vadd.f32 %v2339_v7, %v341_v24  ;;  %v2395_v26 = vpop.f32.mrb[6].mxu0 }
  0xfd   : > { %v362_v27 = vmax.f32 %v350_v23, 0.0  ;;  %v353_v28 = vadd.f32 %v2395_v26, %v2339_v7  ;;  %v344_v29 = vpop.f32.mrb[7].mxu0 }
  0xfe   : > { %v360_v30 = vmax.f32 %v342_v25, 0.0  ;;  %v345_v31 = vadd.f32 %v2339_v7, %v344_v29 }
  0xff   : > { %v363_v32 = vmax.f32 %v353_v28, 0.0 }
 0x100   : > { %v361_v33 = vmax.f32 %v345_v31, 0.0 }
 0x101   : > { %847 = vxpose.xlu0.c.b16.start.end [1/1] (short) (narrow) %v365_v20, 32  ;;  %v367_v34 = vpack.c.bf16 %v363_v32, %v362_v27 }
 0x102   : > { %v366_v35 = vpack.c.bf16 %v361_v33, %v360_v30 }
 0x104   : > { %1310 = vxpose.xlu1.c.b16.start.end [1/1] (short) (narrow) %v366_v35, 32 }
 0x109   : > { %1773 = vxpose.xlu1.c.b16.start.end [1/1] (short) (narrow) %v367_v34, 32 }
 0x162   : > { %v378_v36 = vpop.trf.xlu0 }
 0x163   : > { %2398 = vmatprep.mubr.msk.bf16.mxu1 %vm392_vm1, %v378_v36 }
 0x166   : > { %v379_v37 = vpop.trf.xlu0 }
 0x167   : > { %2399 = vmatmul.mubr.msk.bf16.vlgmr.msra.gmra.mrb[0].mxu1 %vm392_vm1, %v379_v37 }
 0x168   : > { %2403 = vmatpush3.bf16.msra.mxu1 %v2485_v6 }
 0x169   : > { %2408 = vmatprep.subr.bf16.mxu1 %v2485_v6 }
 0x16a   : > { %v855_v38 = vpop.trf.xlu0  ;;  %v1318_v39 = vpop.trf.xlu1 }
 0x16b   : > { %2404 = vmatprep.mubr.msk.bf16.mxu1 %vm392_vm1, %v855_v38 }
 0x16e   : > { %v856_v40 = vpop.trf.xlu0  ;;  %v1319_v41 = vpop.trf.xlu1 }
 0x16f   : > { %2405 = vmatmul.mubr.msk.bf16.vlgmr.msra.gmra.mrb[4].mxu1 %vm392_vm1, %v856_v40 }
 0x170   : > { %2409 = vmatpush3.bf16.msra.mxu1 %v2485_v6  ;;  %2410 = vmatprep.mubr.msk.bf16.mxu1 %vm392_vm1, %v1318_v39 }
 0x172   : > { %v1781_v42 = vpop.trf.xlu1 }
 0x173   : > { %2416 = vmatprep.mubr.msk.bf16.mxu0 %vm392_vm1, %v1781_v42 }
 0x176   : > { %v1782_v43 = vpop.trf.xlu1 }
 0x177   : > { %2411 = vmatmul.mubr.msk.bf16.vlgmr.msra.gmra.mrb[8].mxu1 %vm392_vm1, %v1319_v41  ;;  %2417 = vmatmul.mubr.msk.bf16.vlgmr.msra.gmra.mrb[8].mxu0 %vm392_vm1, %v1782_v43 }
 0x23a   : > { %v2400_v50 = vpop.f32.mrb[0].mxu1 }
 0x23b   : > { %v550_v51 = vcombine.high %v2400_v50, %v2400_v50  ;;  %v557_v52 = vrot.slane %v2400_v50, %v2677_v49  ;;  %v433_v53 = vpop.f32.mrb[1].mxu1 }
 0x23c   : > { %v452_v54 = vcombine.high %v433_v53, %v433_v53  ;;  %v459_v55 = vrot.slane %v433_v53, %v2677_v49  ;;  %v2401_v56 = vpop.f32.mrb[2].mxu1 }
 0x23d   : > { %v564_v58 = vrot.slane %v550_v51, %v2677_v49  ;;  %v565_v59 = vcombine.high %v557_v52, %v557_v52  ;;  %v573_v60 = vrot.slane %v557_v52, %v2677_v49  ;;  %v599_v61 = vcombine.high %v2401_v56, %v2401_v56  ;;  %v436_v62 = vpop.f32.mrb[3].mxu1 }
 0x23e   : > { %v466_v63 = vrot.slane %v452_v54, %v2677_v49  ;;  %v467_v0 = vcombine.high %v459_v55, %v459_v55  ;;  %v475_v1 = vrot.slane %v459_v55, %v2677_v49  ;;  %v606_v2 = vrot.slane %v2401_v56, %v2677_v49 }
 0x23f   : > { %v566_v3 = vcombine.high %v564_v58, %v564_v58  ;;  %v613_v4 = vrot.slane %v599_v61, %v2677_v49  ;;  %v501_v5 = vcombine.high %v436_v62, %v436_v62  ;;  %v508_v6 = vrot.slane %v436_v62, %v2677_v49  ;;  %748 = vrot.lane.b32.xlu0 %v573_v60, %s2567_s26 }
 0x240   : > { %700 = vst.msk [vmem:[%s2696_s29 + $0x40] sm:$0x1] %vm2684_vm2, %v573_v60  ;;  %v468_v7 = vcombine.high %v466_v63, %v466_v63  ;;  %v614_v8 = vcombine.high %v606_v2, %v606_v2  ;;  %v2702_v9 = vrot.slane %v606_v2, %v2677_v49  ;;  %v587_v10 = vrot.slane %v565_v59, %v2677_v49 }
 0x241   : > { %684 = vst.msk [vmem:[%s2696_s29] sm:$0x1] %vm2684_vm2, %v475_v1  ;;  %v615_v11 = vcombine.high %v613_v4, %v613_v4  ;;  %v2709_v12 = vrot.slane %v501_v5, %v2677_v49  ;;  %v516_v13 = vcombine.high %v508_v6, %v508_v6  ;;  %v2712_v14 = vrot.slane %v508_v6, %v2677_v49 }
 0x242   : > { %750 = vrot.lane.b32.xlu1 %v587_v10, %s2567_s26  ;;  %v489_v15 = vrot.slane %v467_v0, %v2677_v49  ;;  %v595_v16 = vcombine.high %v573_v60, %v573_v60  ;;  %v497_v17 = vcombine.high %v475_v1, %v475_v1  ;;  %v2717_v18 = vrot.slane %v564_v58, %v2677_v49  ;;  %v2406_v19 = vpop.f32.mrb[4].mxu1 }
 0x243   : > { %701 = vst.msk [vmem:[%s2696_s29 + $0x44] sm:$0x1] %vm2684_vm2, %v587_v10  ;;  %708 = vst.msk [vmem:[%s2696_s29 + $0x60] sm:$0x1] %vm2684_vm2, %v2702_v9  ;;  %v517_v20 = vcombine.high %v2709_v12, %v2709_v12  ;;  %716 = vrot.lane.b32.xlu0 %v475_v1, %s2567_s26  ;;  %v2729_v21 = vcombine.high %v587_v10, %v587_v10  ;;  %v2732_v22 = vrot.slane %v566_v3, %v2677_v49  ;;  %v903_v24 = vpop.f32.mrb[5].mxu1 }
 0x244   : > { %v2735_v23 = vrot.slane %v466_v63, %v2677_v49  ;;  %692 = vst.msk [vmem:[%s2696_s29 + $0x20] sm:$0x1] %vm2684_vm2, %v2712_v14  ;;  %v2742_v25 = vrot.slane %v614_v8, %v2677_v49  ;;  %v2744_v26 = vcombine.high %v489_v15, %v489_v15  ;;  %v2748_v27 = vcombine.high %v2717_v18, %v2717_v18  ;;  %v2407_v29 = vpop.f32.mrb[6].mxu1 }
 0x245   : > { %v2751_v28 = vrot.slane %v468_v7, %v2677_v49  ;;  %685 = vst.msk [vmem:[%s2696_s29 + $0x4] sm:$0x1] %vm2684_vm2, %v489_v15  ;;  %686 = vst.msk [vmem:[%s2696_s29 + $0x8] sm:$0x1] %vm2684_vm2, %v497_v17  ;;  %v2768_v30 = vcombine.high %v2702_v9, %v2702_v9  ;;  %v2771_v31 = vrot.slane %v516_v13, %v2677_v49  ;;  %v906_v34 = vpop.f32.mrb[7].mxu1 }
 0x246   : > { %702 = vst.msk [vmem:[%s2696_s29 + $0x48] sm:$0x1] %vm2684_vm2, %v595_v16  ;;  %704 = vst.msk [vmem:[%s2696_s29 + $0x50] sm:$0x1] %vm2684_vm2, %v2717_v18  ;;  %v2774_v32 = vrot.slane %v613_v4, %v2677_v49  ;;  %v2778_v33 = vcombine.high %v2732_v22, %v2732_v22  ;;  %718 = vrot.lane.b32.xlu1 %v489_v15, %s2567_s26  ;;  %v2795_v35 = vcombine.high %v2735_v23, %v2735_v23 }
 0x247   : > { %688 = vst.msk [vmem:[%s2696_s29 + $0x10] sm:$0x1] %vm2684_vm2, %v2735_v23  ;;  %703 = vst.msk [vmem:[%s2696_s29 + $0x4c] sm:$0x1] %vm2684_vm2, %v2729_v21  ;;  %v2799_v36 = vcombine.high %v2742_v25, %v2742_v25  ;;  %v2803_v37 = vcombine.high %v2712_v14, %v2712_v14  ;;  %v2806_v38 = vrot.slane %v615_v11, %v2677_v49  ;;  %752 = vrot.lane.b32.xlu0 %v595_v16, %s2567_s26 }
 0x248   : > { %705 = vst.msk [vmem:[%s2696_s29 + $0x54] sm:$0x1] %vm2684_vm2, %v2732_v22  ;;  %687 = vst.msk [vmem:[%s2696_s29 + $0xc] sm:$0x1] %vm2684_vm2, %v2744_v26  ;;  %v2827_v39 = vrot.slane %v2709_v12, %v2677_v49  ;;  %v1020_v40 = vcombine.high %v2406_v19, %v2406_v19  ;;  %v2830_v41 = vrot.slane %v2406_v19, %v2677_v49 }
 0x249   : > { %689 = vst.msk [vmem:[%s2696_s29 + $0x14] sm:$0x1] %vm2684_vm2, %v2751_v28  ;;  %706 = vst.msk [vmem:[%s2696_s29 + $0x58] sm:$0x1] %vm2684_vm2, %v2748_v27  ;;  %v922_v42 = vcombine.high %v903_v24, %v903_v24  ;;  %v2849_v43 = vrot.slane %v903_v24, %v2677_v49  ;;  %v2853_v44 = vcombine.high %v2751_v28, %v2751_v28 }
 0x24a   : > { %709 = vst.msk [vmem:[%s2696_s29 + $0x64] sm:$0x1] %vm2684_vm2, %v2742_v25  ;;  %693 = vst.msk [vmem:[%s2696_s29 + $0x24] sm:$0x1] %vm2684_vm2, %v2771_v31  ;;  %v1069_v45 = vcombine.high %v2407_v29, %v2407_v29  ;;  %v2856_v47 = vrot.slane %v2407_v29, %v2677_v49  ;;  %v2875_v48 = vrot.slane %v1020_v40, %v2677_v49  ;;  %720 = vrot.lane.b32.xlu1 %v497_v17, %s2567_s26  ;;  %v2412_v58 = vpop.f32.mrb[8].mxu1  ;;  %v2906_v59 = vpop.f32.mrb[8].mxu0 }
 0x24b   : > { %707 = vst.msk [vmem:[%s2696_s29 + $0x5c] sm:$0x1] %vm2684_vm2, %v2778_v33  ;;  %710 = vst.msk [vmem:[%s2696_s29 + $0x68] sm:$0x1] %vm2684_vm2, %v2768_v30  ;;  %v2881_v51 = vrot.slane %v2830_v41, %v2677_v49  ;;  %v2884_v52 = vrot.slane %v922_v42, %v2677_v49  ;;  %v2895_v54 = vrot.slane %v2849_v43, %v2677_v49  ;;  %756 = vrot.lane.b32.xlu0 %v2717_v18, %s2567_s26  ;;  %v1366_v0 = vpop.f32.mrb[9].mxu1  ;;  %v2922_v1 = vpop.f32.mrb[9].mxu0 }
 0x24c   : > { %712 = vst.msk [vmem:[%s2696_s29 + $0x70] sm:$0x1] %vm2684_vm2, %v2774_v32  ;;  %690 = vst.msk [vmem:[%s2696_s29 + $0x18] sm:$0x1] %vm2684_vm2, %v2795_v35  ;;  %v2898_v55 = vrot.slane %v1069_v45, %v2677_v49  ;;  %v2916_v62 = vrot.slane %v2856_v47, %v2677_v49  ;;  %v971_v63 = vcombine.high %v906_v34, %v906_v34  ;;  %v2413_v6 = vpop.f32.mrb[10].mxu1  ;;  %v2937_v7 = vpop.f32.mrb[10].mxu0 }
 0x24d   : > { %694 = vst.msk [vmem:[%s2696_s29 + $0x28] sm:$0x1] %vm2684_vm2, %v2803_v37  ;;  %711 = vst.msk [vmem:[%s2696_s29 + $0x6c] sm:$0x1] %vm2684_vm2, %v2799_v36  ;;  %v2927_v3 = vrot.slane %v906_v34, %v2677_v49  ;;  %v2931_v4 = vcombine.high %v2774_v32, %v2774_v32  ;;  %v1483_v5 = vcombine.high %v2412_v58, %v2412_v58  ;;  %v1369_v15 = vpop.f32.mrb[11].mxu1  ;;  %v2948_v16 = vpop.f32.mrb[11].mxu0 }
 0x24e   : > { %713 = vst.msk [vmem:[%s2696_s29 + $0x74] sm:$0x1] %vm2684_vm2, %v2806_v38  ;;  %696 = vst.msk [vmem:[%s2696_s29 + $0x30] sm:$0x1] %vm2684_vm2, %v2827_v39  ;;  %v2940_v8 = vrot.slane %v971_v63, %v2677_v49  ;;  %v1490_v10 = vrot.slane %v2412_v58, %v2677_v49  ;;  %v1385_v11 = vcombine.high %v1366_v0, %v1366_v0  ;;  %754 = vrot.lane.b32.xlu1 %v2729_v21, %s2567_s26 }
 0x24f   : > { %691 = vst.msk [vmem:[%s2696_s29 + $0x1c] sm:$0x1] %vm2684_vm2, %v2853_v44  ;;  %1166 = vst.msk [vmem:[%s2696_s29 + $0x41] sm:$0x1] %vm2684_vm2, %v2881_v51  ;;  %v1392_v13 = vrot.slane %v1366_v0, %v2677_v49  ;;  %v2956_v18 = vrot.slane %v2927_v3, %v2677_v49  ;;  %v2959_v19 = vrot.slane %v1483_v5, %v2677_v49  ;;  %764 = vrot.lane.b32.xlu0 %v2702_v9, %s2567_s26 }
 0x250   : > { %1150 = vst.msk [vmem:[%s2696_s29 + $0x1] sm:$0x1] %vm2684_vm2, %v2895_v54  ;;  %1174 = vst.msk [vmem:[%s2696_s29 + $0x61] sm:$0x1] %vm2684_vm2, %v2916_v62  ;;  %v2963_v24 = vcombine.high %v2771_v31, %v2771_v31  ;;  %v1498_v29 = vcombine.high %v1490_v10, %v1490_v10  ;;  %v2974_v34 = vrot.slane %v1490_v10, %v2677_v49 }
 0x251   : > { %714 = vst.msk [vmem:[%s2696_s29 + $0x78] sm:$0x1] %vm2684_vm2, %v2931_v4  ;;  %v2977_v40 = vrot.slane %v1385_v11, %v2677_v49  ;;  %v2983_v45 = vrot.slane %v2959_v19, %v2677_v49  ;;  %v1400_v9 = vcombine.high %v1392_v13, %v1392_v13  ;;  %v2986_v58 = vrot.slane %v1392_v13, %v2677_v49 }
 0x252   : > { %4541 = vst [vmem:[#allocation5_spill] sm:$0xff] %v2974_v34  ;;  %695 = vst.msk [vmem:[%s2696_s29 + $0x2c] sm:$0x1] %vm2684_vm2, %v2963_v24  ;;  %v2997_v63 = vrot.slane %v1498_v29, %v2677_v49  ;;  %v1532_v10 = vcombine.high %v2413_v6, %v2413_v6  ;;  %758 = vrot.lane.b32.xlu1 %v2732_v22, %s2567_s26  ;;  %v1539_v13 = vrot.slane %v2413_v6, %v2677_v49 }
 0x253   : > { %4542 = vst [vmem:[#allocation6_spill] sm:$0xff] %v2986_v58  ;;  %1158 = vst.msk [vmem:[%s2696_s29 + $0x21] sm:$0x1] %vm2684_vm2, %v2956_v18  ;;  %v3003_v5 = vrot.slane %v2977_v40, %v2677_v49  ;;  %v3012_v11 = vrot.slane %v1400_v9, %v2677_v49  ;;  %v1434_v29 = vcombine.high %v1369_v15, %v1369_v15  ;;  %724 = vrot.lane.b32.xlu0 %v2735_v23, %s2567_s26 }
 0x254   : > { %4543 = vst [vmem:[#allocation7_spill] sm:$0xff] %v2997_v63  ;;  %1629 = vst.msk [vmem:[%s2696_s29 + $0x42] sm:$0x1] %vm2684_vm2, %v2974_v34  ;;  %v1441_v46 = vrot.slane %v1369_v15, %v2677_v49  ;;  %v3027_v22 = vrot.slane %v1532_v10, %v2677_v49  ;;  %v1946_v6 = vcombine.high %v2906_v59, %v2906_v59 }
 0x255   : > { %1613 = vst.msk [vmem:[%s2696_s29 + $0x2] sm:$0x1] %vm2684_vm2, %v2986_v58  ;;  %1633 = vst.msk [vmem:[%s2696_s29 + $0x52] sm:$0x1] %vm2684_vm2, %v2983_v45  ;;  %v1953_v15 = vrot.slane %v2906_v59, %v2677_v49  ;;  %v3043_v23 = vcombine.high %v2827_v39, %v2827_v39  ;;  %v1547_v9 = vcombine.high %v1539_v13, %v1539_v13 }
 0x256   : > { %1617 = vst.msk [vmem:[%s2696_s29 + $0x12] sm:$0x1] %vm2684_vm2, %v3003_v5  ;;  %1630 = vst.msk [vmem:[%s2696_s29 + $0x46] sm:$0x1] %vm2684_vm2, %v2997_v63  ;;  %v3046_v10 = vrot.slane %v1539_v13, %v2677_v49  ;;  %v1448_v0 = vrot.slane %v1434_v29, %v2677_v49  ;;  %v1449_v42 = vcombine.high %v1441_v46, %v1441_v46  ;;  %766 = vrot.lane.b32.xlu1 %v2742_v25, %s2567_s26 }
 0x257   : > { %1614 = vst.msk [vmem:[%s2696_s29 + $0x6] sm:$0x1] %vm2684_vm2, %v3012_v11  ;;  %v3057_v21 = vrot.slane %v3027_v22, %v2677_v49  ;;  %v3060_v2 = vrot.slane %v1441_v46, %v2677_v49  ;;  %v3063_v13 = vrot.slane %v1946_v6, %v2677_v49  ;;  %698 = vst.msk [vmem:[%s2696_s29 + $0x38] sm:$0x1] %vm2684_vm2, %v3043_v23  ;;  %732 = vrot.lane.b32.xlu0 %v2712_v14, %s2567_s26 }
 0x258   : > { %4544 = vst [vmem:[#allocation8_spill] sm:$0xff] %v3046_v10  ;;  %v3072_v29 = vrot.slane %v1547_v9, %v2677_v49  ;;  %v1450_v59 = vcombine.high %v1448_v0, %v1448_v0  ;;  %v3075_v46 = vrot.slane %v1448_v0, %v2677_v49  ;;  %v3078_v6 = vrot.slane %v1449_v42, %v2677_v49 }
 0x259   : > { %4545 = vst [vmem:[#allocation9_spill] sm:$0xff] %v3060_v2  ;;  %1637 = vst.msk [vmem:[%s2696_s29 + $0x62] sm:$0x1] %vm2684_vm2, %v3046_v10  ;;  %v3088_v25 = vcombine.high %v3060_v2, %v3060_v2  ;;  %v1961_v42 = vcombine.high %v1953_v15, %v1953_v15  ;;  %v1962_v0 = vcombine.high %v3063_v13, %v3063_v13 }
 0x25a   : > { %4546 = vst [vmem:[#allocation10_spill] sm:$0xff] %v3075_v46  ;;  %1621 = vst.msk [vmem:[%s2696_s29 + $0x22] sm:$0x1] %vm2684_vm2, %v3060_v2  ;;  %v3101_v9 = vrot.slane %v1953_v15, %v2677_v49  ;;  %v3104_v14 = vrot.slane %v1450_v59, %v2677_v49  ;;  %v3122_v15 = vrot.slane %v517_v20, %v2677_v49  ;;  %722 = vrot.lane.b32.xlu1 %v2744_v26, %s2567_s26 }
 0x25b   : > { %4547 = vst [vmem:[#allocation11_spill] sm:$0xff] %v3088_v25  ;;  %1641 = vst.msk [vmem:[%s2696_s29 + $0x72] sm:$0x1] %vm2684_vm2, %v3057_v21  ;;  %v1848_v59 = vcombine.high %v2922_v1, %v2922_v1  ;;  %v1855_v17 = vrot.slane %v2922_v1, %v2677_v49  ;;  %v1995_v12 = vcombine.high %v2937_v7, %v2937_v7  ;;  %760 = vrot.lane.b32.xlu0 %v2748_v27, %s2567_s26 }
 0x25c   : > { %1622 = vst.msk [vmem:[%s2696_s29 + $0x26] sm:$0x1] %vm2684_vm2, %v3078_v6  ;;  %1625 = vst.msk [vmem:[%s2696_s29 + $0x32] sm:$0x1] %vm2684_vm2, %v3075_v46  ;;  %v2002_v20 = vrot.slane %v2937_v7, %v2677_v49  ;;  %v3142_v61 = vcombine.high %v2806_v38, %v2806_v38  ;;  %v1897_v1 = vcombine.high %v2948_v16, %v2948_v16 }
 0x25d   : > { %1638 = vst.msk [vmem:[%s2696_s29 + $0x66] sm:$0x1] %vm2684_vm2, %v3072_v29  ;;  %1623 = vst.msk [vmem:[%s2696_s29 + $0x2a] sm:$0x1] %vm2684_vm2, %v3088_v25  ;;  %v1862_v7 = vrot.slane %v1848_v59, %v2677_v49  ;;  %v1863_v56 = vcombine.high %v1855_v17, %v1855_v17  ;;  %v3158_v60 = vrot.slane %v1855_v17, %v2677_v49 }
 0x25e   : > { %2092 = vst.msk [vmem:[%s2696_s29 + $0x43] sm:$0x1] %vm2684_vm2, %v3101_v9  ;;  %4548 = vst [vmem:[#allocation12_spill] sm:$0xff] %v3142_v61  ;;  %v1904_v53 = vrot.slane %v2948_v16, %v2677_v49  ;;  %v3165_v26 = vrot.slane %v1995_v12, %v2677_v49  ;;  %v2010_v50 = vcombine.high %v2002_v20, %v2002_v20  ;;  %726 = vrot.lane.b32.xlu1 %v2751_v28, %s2567_s26 }
 0x25f   : > { %1626 = vst.msk [vmem:[%s2696_s29 + $0x36] sm:$0x1] %vm2684_vm2, %v3104_v14  ;;  %697 = vst.msk [vmem:[%s2696_s29 + $0x34] sm:$0x1] %vm2684_vm2, %v3122_v15  ;;  %v3168_v25 = vrot.slane %v2002_v20, %v2677_v49  ;;  %v3175_v17 = vrot.slane %v1897_v1, %v2677_v49  ;;  %v1864_v16 = vcombine.high %v1862_v7, %v1862_v7  ;;  %768 = vrot.lane.b32.xlu0 %v2768_v30, %s2567_s26 }
 0x260   : > { %715 = vst.msk [vmem:[%s2696_s29 + $0x7c] sm:$0x1] %vm2684_vm2, %v3142_v61  ;;  %2076 = vst.msk [vmem:[%s2696_s29 + $0x3] sm:$0x1] %vm2684_vm2, %v3158_v60  ;;  %v1912_v27 = vcombine.high %v1904_v53, %v1904_v53  ;;  %v3182_v59 = vrot.slane %v1904_v53, %v2677_v49  ;;  %v3186_v12 = vcombine.high %v3122_v15, %v3122_v15 }
 0x261   : > { %2100 = vst.msk [vmem:[%s2696_s29 + $0x63] sm:$0x1] %vm2684_vm2, %v3168_v25  ;;  %v3197_v2 = vrot.slane %v1961_v42, %v2677_v49  ;;  %v4550_v53 = vcombine.high %v2830_v41, %v2830_v41  ;;  %v3217_v41 = vcombine.high %v3101_v9, %v3101_v9  ;;  %v3220_v42 = vrot.slane %v1863_v56, %v2677_v49 }
 0x262   : > { %2084 = vst.msk [vmem:[%s2696_s29 + $0x23] sm:$0x1] %vm2684_vm2, %v3182_v59  ;;  %699 = vst.msk [vmem:[%s2696_s29 + $0x3c] sm:$0x1] %vm2684_vm2, %v3186_v12  ;;  %v3224_v28 = vrot.slane %v3063_v13, %v2677_v49  ;;  %v3248_v56 = vcombine.high %v2881_v51, %v2881_v51  ;;  %v3251_v30 = vrot.slane %v1962_v0, %v2677_v49  ;;  %734 = vrot.lane.b32.xlu1 %v2771_v31, %s2567_s26 }
 0x263   : > { %4549 = vst [vmem:[#allocation13_spill] sm:$0xff] %v3197_v2  ;;  %v3203_v61 = vrot.slane %v4550_v53, %v2677_v49  ;;  %4551 = vst [vmem:[#allocation14_spill] sm:$0xff] %v3217_v41  ;;  %v4552_v53 = vcombine.high %v2849_v43, %v2849_v43  ;;  %v3244_v43 = vcombine.high %v3197_v2, %v3197_v2  ;;  %772 = vrot.lane.b32.xlu0 %v2774_v32, %s2567_s26 }
 0x264   : > { %2093 = vst.msk [vmem:[%s2696_s29 + $0x47] sm:$0x1] %vm2684_vm2, %v3197_v2  ;;  %4554 = vst [vmem:[#allocation16_spill] sm:$0xff] %v3248_v56  ;;  %v3255_v13 = vrot.slane %v2875_v48, %v2677_v49  ;;  %v3274_v0 = vrot.slane %v2010_v50, %v2677_v49  ;;  %v3282_v20 = vcombine.high %v3158_v60, %v3158_v60 }
 0x265   : > { %v3230_v1 = vrot.slane %v4552_v53, %v2677_v49  ;;  %1167 = vst.msk [vmem:[%s2696_s29 + $0x45] sm:$0x1] %vm2684_vm2, %v3203_v61  ;;  %4553 = vst [vmem:[#allocation15_spill] sm:$0xff] %v3244_v43  ;;  %v3278_v53 = vcombine.high %v3203_v61, %v3203_v61  ;;  %v4559_v50 = vcombine.high %v2856_v47, %v2856_v47  ;;  %v4594_v57 = vld [vmem:[#allocation12_spill] sm:$0xff] }
 0x266   : > { %2094 = vst.msk [vmem:[%s2696_s29 + $0x4b] sm:$0x1] %vm2684_vm2, %v3217_v41  ;;  %2077 = vst.msk [vmem:[%s2696_s29 + $0x7] sm:$0x1] %vm2684_vm2, %v3220_v42  ;;  %v4558_v41 = vcombine.high %v2875_v48, %v2875_v48  ;;  %v3307_v48 = vrot.slane %v1862_v7, %v2677_v49  ;;  %v3342_v31 = vrot.slane %v1864_v16, %v2677_v49  ;;  %762 = vrot.lane.b32.xlu1 %v2778_v33, %s2567_s26 }
 0x267   : > { %2096 = vst.msk [vmem:[%s2696_s29 + $0x53] sm:$0x1] %vm2684_vm2, %v3224_v28  ;;  %1151 = vst.msk [vmem:[%s2696_s29 + $0x5] sm:$0x1] %vm2684_vm2, %v3230_v1  ;;  %v3346_v47 = vrot.slane %v2884_v52, %v2677_v49  ;;  %v3349_v7 = vrot.slane %v1912_v27, %v2677_v49  ;;  %v3375_v32 = vcombine.high %v3224_v28, %v3224_v28  ;;  %728 = vrot.lane.b32.xlu0 %v2795_v35, %s2567_s26 }
 0x268   : > { %4555 = vst [vmem:[#allocation17_spill] sm:$0xff] %v3274_v0  ;;  %4556 = vst [vmem:[#allocation18_spill] sm:$0xff] %v3278_v53  ;;  %v3288_v2 = vrot.slane %v4558_v41, %v2677_v49  ;;  %v3313_v41 = vrot.slane %v4559_v50, %v2677_v49  ;;  %v3353_v50 = vcombine.high %v3230_v1, %v3230_v1 }
 0x269   : > { %4557 = vst [vmem:[#allocation19_spill] sm:$0xff] %v3282_v20  ;;  %2095 = vst.msk [vmem:[%s2696_s29 + $0x4f] sm:$0x1] %vm2684_vm2, %v3244_v43  ;;  %v3321_v43 = vcombine.high %v2895_v54, %v2895_v54  ;;  %v4564_v16 = vcombine.high %v2884_v52, %v2884_v52  ;;  %v3411_v52 = vrot.slane %v3165_v26, %v2677_v49 }
 0x26a   : > { %1168 = vst.msk [vmem:[%s2696_s29 + $0x49] sm:$0x1] %vm2684_vm2, %v3248_v56  ;;  %2097 = vst.msk [vmem:[%s2696_s29 + $0x57] sm:$0x1] %vm2684_vm2, %v3251_v30  ;;  %v3317_v56 = vcombine.high %v3220_v42, %v3220_v42  ;;  %v3479_v33 = vcombine.high %v3307_v48, %v3307_v48  ;;  %v3515_v35 = vrot.slane %v3175_v17, %v2677_v49  ;;  %770 = vrot.lane.b32.xlu1 %v2799_v36, %s2567_s26 }
 0x26b   : > { %1170 = vst.msk [vmem:[%s2696_s29 + $0x51] sm:$0x1] %vm2684_vm2, %v3255_v13  ;;  %4561 = vst [vmem:[#allocation21_spill] sm:$0xff] %v3321_v43  ;;  %v3381_v27 = vrot.slane %v4564_v16, %v2677_v49  ;;  %v3423_v16 = vcombine.high %v3274_v0, %v3274_v0  ;;  %736 = vrot.lane.b32.xlu0 %v2803_v37, %s2567_s26 }
 0x26c   : > { %4560 = vst [vmem:[#allocation20_spill] sm:$0xff] %v3317_v56  ;;  %2101 = vst.msk [vmem:[%s2696_s29 + $0x67] sm:$0x1] %vm2684_vm2, %v3274_v0  ;;  %v3457_v0 = vcombine.high %v3288_v2, %v3288_v2 }
 0x26d   : > { %1169 = vst.msk [vmem:[%s2696_s29 + $0x4d] sm:$0x1] %vm2684_vm2, %v3278_v53  ;;  %2078 = vst.msk [vmem:[%s2696_s29 + $0xb] sm:$0x1] %vm2684_vm2, %v3282_v20  ;;  %v3385_v20 = vcombine.high %v3168_v25, %v3168_v25 }
 0x26e   : > { %1171 = vst.msk [vmem:[%s2696_s29 + $0x55] sm:$0x1] %vm2684_vm2, %v3288_v2  ;;  %4562 = vst [vmem:[#allocation22_spill] sm:$0xff] %v3353_v50  ;;  %774 = vrot.lane.b32.xlu1 %v2806_v38, %s2567_s26  ;;  %v3759_v38 = vcombine.high %v3057_v21, %v3057_v21 }
 0x26f   : > { %2080 = vst.msk [vmem:[%s2696_s29 + $0x13] sm:$0x1] %vm2684_vm2, %v3307_v48  ;;  %1175 = vst.msk [vmem:[%s2696_s29 + $0x65] sm:$0x1] %vm2684_vm2, %v3313_v41  ;;  %740 = vrot.lane.b32.xlu0 %v2827_v39, %s2567_s26  ;;  %v3789_v39 = vcombine.high %v3411_v52, %v3411_v52 }
 0x270   : > { %2079 = vst.msk [vmem:[%s2696_s29 + $0xf] sm:$0x1] %vm2684_vm2, %v3317_v56  ;;  %1152 = vst.msk [vmem:[%s2696_s29 + $0x9] sm:$0x1] %vm2684_vm2, %v3321_v43  ;;  %v4566_v56 = vcombine.high %v2927_v3, %v2927_v3  ;;  %v3415_v3 = vcombine.high %v3251_v30, %v3251_v30 }
 0x271   : > { %4563 = vst [vmem:[#allocation23_spill] sm:$0xff] %v3375_v32  ;;  %4565 = vst [vmem:[#allocation24_spill] sm:$0xff] %v3385_v20 }
 0x272   : > { %v3391_v43 = vrot.slane %v4566_v56, %v2677_v49  ;;  %2081 = vst.msk [vmem:[%s2696_s29 + $0x17] sm:$0x1] %vm2684_vm2, %v3342_v31  ;;  %1154 = vst.msk [vmem:[%s2696_s29 + $0x11] sm:$0x1] %vm2684_vm2, %v3346_v47  ;;  %v3419_v56 = vcombine.high %v3255_v13, %v3255_v13  ;;  %730 = vrot.lane.b32.xlu1 %v2853_v44, %s2567_s26  ;;  %v4595_v44 = vld [vmem:[#allocation13_spill] sm:$0xff] }
 0x273   : > { %2085 = vst.msk [vmem:[%s2696_s29 + $0x27] sm:$0x1] %vm2684_vm2, %v3349_v7  ;;  %1153 = vst.msk [vmem:[%s2696_s29 + $0xd] sm:$0x1] %vm2684_vm2, %v3353_v50  ;;  %v3443_v50 = vcombine.high %v2916_v62, %v2916_v62  ;;  %776 = vrot.lane.b32.xlu0 %v2931_v4, %s2567_s26  ;;  %v4596_v4 = vld [vmem:[#allocation14_spill] sm:$0xff] }
 0x274   : > { %4567 = vst [vmem:[#allocation25_spill] sm:$0xff] %v3415_v3  ;;  %4568 = vst [vmem:[#allocation26_spill] sm:$0xff] %v3419_v56 }
 0x275   : > { %4569 = vst [vmem:[#allocation27_spill] sm:$0xff] %v3423_v16  ;;  %2098 = vst.msk [vmem:[%s2696_s29 + $0x5b] sm:$0x1] %vm2684_vm2, %v3375_v32  ;;  %v4571_v32 = vcombine.high %v3165_v26, %v3165_v26  ;;  %v3483_v26 = vcombine.high %v3313_v41, %v3313_v41 }
 0x276   : > { %1155 = vst.msk [vmem:[%s2696_s29 + $0x15] sm:$0x1] %vm2684_vm2, %v3381_v27  ;;  %2102 = vst.msk [vmem:[%s2696_s29 + $0x6b] sm:$0x1] %vm2684_vm2, %v3385_v20  ;;  %v3453_v20 = vrot.slane %v2898_v55, %v2677_v49  ;;  %738 = vrot.lane.b32.xlu1 %v2963_v24, %s2567_s26  ;;  %v4601_v24 = vld [vmem:[#allocation19_spill] sm:$0xff] }
 0x277   : > { %1159 = vst.msk [vmem:[%s2696_s29 + $0x25] sm:$0x1] %vm2684_vm2, %v3391_v43  ;;  %4570 = vst [vmem:[#allocation28_spill] sm:$0xff] %v3443_v50  ;;  %v3449_v53 = vrot.slane %v4571_v32, %v2677_v49  ;;  %v3487_v32 = vcombine.high %v3182_v59, %v3182_v59  ;;  %744 = vrot.lane.b32.xlu0 %v3043_v23, %s2567_s26  ;;  %v4603_v23 = vld [vmem:[#allocation20_spill] sm:$0xff] }
 0x278   : > { %4572 = vst [vmem:[#allocation29_spill] sm:$0xff] %v3457_v0  ;;  %2104 = vst.msk [vmem:[%s2696_s29 + $0x73] sm:$0x1] %vm2684_vm2, %v3411_v52 }
 0x279   : > { %2099 = vst.msk [vmem:[%s2696_s29 + $0x5f] sm:$0x1] %vm2684_vm2, %v3415_v3  ;;  %1172 = vst.msk [vmem:[%s2696_s29 + $0x59] sm:$0x1] %vm2684_vm2, %v3419_v56  ;;  %v4576_v56 = vcombine.high %v2898_v55, %v2898_v55  ;;  %v3519_v55 = vcombine.high %v3342_v31, %v3342_v31 }
 0x27a   : > { %2103 = vst.msk [vmem:[%s2696_s29 + $0x6f] sm:$0x1] %vm2684_vm2, %v3423_v16  ;;  %4573 = vst [vmem:[#allocation30_spill] sm:$0xff] %v3479_v33  ;;  %v3561_v16 = vcombine.high %v3381_v27, %v3381_v27  ;;  %742 = vrot.lane.b32.xlu1 %v3122_v15, %s2567_s26 }
 0x27b   : > { %4574 = vst [vmem:[#allocation31_spill] sm:$0xff] %v3483_v26  ;;  %4575 = vst [vmem:[#allocation32_spill] sm:$0xff] %v3487_v32  ;;  %v3493_v3 = vrot.slane %v4576_v56, %v2677_v49  ;;  %v3523_v56 = vcombine.high %v3346_v47, %v3346_v47  ;;  %2140 = vrot.lane.b32.xlu0 %v3101_v9, %s2567_s26 }
 0x27c   : > { %1176 = vst.msk [vmem:[%s2696_s29 + $0x69] sm:$0x1] %vm2684_vm2, %v3443_v50  ;;  %2105 = vst.msk [vmem:[%s2696_s29 + $0x77] sm:$0x1] %vm2684_vm2, %v3449_v53  ;;  %v3527_v50 = vcombine.high %v3349_v7, %v3349_v7 }
 0x27d   : > { %1178 = vst.msk [vmem:[%s2696_s29 + $0x71] sm:$0x1] %vm2684_vm2, %v3453_v20  ;;  %1173 = vst.msk [vmem:[%s2696_s29 + $0x5d] sm:$0x1] %vm2684_vm2, %v3457_v0  ;;  %v3547_v0 = vcombine.high %v2956_v18, %v2956_v18 }
 0x27e   : > { %4577 = vst [vmem:[#allocation33_spill] sm:$0xff] %v3519_v55  ;;  %4578 = vst [vmem:[#allocation34_spill] sm:$0xff] %v3523_v56  ;;  %778 = vrot.lane.b32.xlu1 %v4594_v57, %s2567_s26  ;;  %v4612_v57 = vld [vmem:[#allocation27_spill] sm:$0xff] }
 0x27f   : > { %4579 = vst [vmem:[#allocation35_spill] sm:$0xff] %v3527_v50  ;;  %2082 = vst.msk [vmem:[%s2696_s29 + $0x1b] sm:$0x1] %vm2684_vm2, %v3479_v33  ;;  %v4581_v33 = vcombine.high %v3175_v17, %v3175_v17  ;;  %v3581_v17 = vcombine.high %v3453_v20, %v3453_v20  ;;  %1214 = vrot.lane.b32.xlu0 %v2881_v51, %s2567_s26  ;;  %v4597_v51 = vld [vmem:[#allocation15_spill] sm:$0xff] }
 0x280   : > { %1177 = vst.msk [vmem:[%s2696_s29 + $0x6d] sm:$0x1] %vm2684_vm2, %v3483_v26  ;;  %2086 = vst.msk [vmem:[%s2696_s29 + $0x2b] sm:$0x1] %vm2684_vm2, %v3487_v32  ;;  %v3557_v32 = vrot.slane %v2940_v8, %v2677_v49 }
 0x281   : > { %1179 = vst.msk [vmem:[%s2696_s29 + $0x75] sm:$0x1] %vm2684_vm2, %v3493_v3  ;;  %4580 = vst [vmem:[#allocation36_spill] sm:$0xff] %v3547_v0  ;;  %v3553_v26 = vrot.slane %v4581_v33, %v2677_v49  ;;  %v3585_v33 = vcombine.high %v3391_v43, %v3391_v43 }
 0x282   : > { %2088 = vst.msk [vmem:[%s2696_s29 + $0x33] sm:$0x1] %vm2684_vm2, %v3515_v35  ;;  %2083 = vst.msk [vmem:[%s2696_s29 + $0x1f] sm:$0x1] %vm2684_vm2, %v3519_v55  ;;  %v3589_v55 = vcombine.high %v3515_v35, %v3515_v35  ;;  %v3617_v36 = vcombine.high %v3557_v32, %v3557_v32  ;;  %746 = vrot.lane.b32.xlu1 %v3186_v12, %s2567_s26 }
 0x283   : > { %1156 = vst.msk [vmem:[%s2696_s29 + $0x19] sm:$0x1] %vm2684_vm2, %v3523_v56  ;;  %2087 = vst.msk [vmem:[%s2696_s29 + $0x2f] sm:$0x1] %vm2684_vm2, %v3527_v50  ;;  %v4585_v56 = vcombine.high %v2940_v8, %v2940_v8  ;;  %v3621_v8 = vcombine.high %v3493_v3, %v3493_v3  ;;  %2108 = vrot.lane.b32.xlu0 %v3158_v60, %s2567_s26  ;;  %v4599_v60 = vld [vmem:[#allocation17_spill] sm:$0xff] }
 0x284   : > { %4582 = vst [vmem:[#allocation37_spill] sm:$0xff] %v3581_v17  ;;  %4583 = vst [vmem:[#allocation38_spill] sm:$0xff] %v3585_v33 }
 0x285   : > { %4584 = vst [vmem:[#allocation39_spill] sm:$0xff] %v3589_v55  ;;  %v3595_v50 = vrot.slane %v4585_v56, %v2677_v49  ;;  %1160 = vst.msk [vmem:[%s2696_s29 + $0x29] sm:$0x1] %vm2684_vm2, %v3547_v0  ;;  %v3625_v56 = vcombine.high %v3553_v26, %v3553_v26  ;;  %v3629_v0 = vcombine.high %v2974_v34, %v2974_v34 }
 0x286   : > { %2089 = vst.msk [vmem:[%s2696_s29 + $0x37] sm:$0x1] %vm2684_vm2, %v3553_v26  ;;  %1162 = vst.msk [vmem:[%s2696_s29 + $0x31] sm:$0x1] %vm2684_vm2, %v3557_v32  ;;  %v3655_v34 = vcombine.high %v2997_v63, %v2997_v63  ;;  %v4590_v63 = vcombine.high %v2977_v40, %v2977_v40  ;;  %2142 = vrot.lane.b32.xlu1 %v4595_v44, %s2567_s26  ;;  %v4613_v44 = vld [vmem:[#allocation28_spill] sm:$0xff] }
 0x287   : > { %1157 = vst.msk [vmem:[%s2696_s29 + $0x1d] sm:$0x1] %vm2684_vm2, %v3561_v16  ;;  %4586 = vst [vmem:[#allocation40_spill] sm:$0xff] %v3625_v56  ;;  %v3651_v37 = vcombine.high %v3595_v50, %v3595_v50  ;;  %1182 = vrot.lane.b32.xlu0 %v2895_v54, %s2567_s26  ;;  %v4598_v54 = vld [vmem:[#allocation16_spill] sm:$0xff] }
 0x288   : > { %1180 = vst.msk [vmem:[%s2696_s29 + $0x79] sm:$0x1] %vm2684_vm2, %v3581_v17  ;;  %1161 = vst.msk [vmem:[%s2696_s29 + $0x2d] sm:$0x1] %vm2684_vm2, %v3585_v33  ;;  %v3659_v33 = vcombine.high %v2986_v58, %v2986_v58  ;;  %v3695_v58 = vrot.slane %v4590_v63, %v2677_v49  ;;  %v3723_v63 = vcombine.high %v3003_v5, %v3003_v5 }
 0x289   : > { %2090 = vst.msk [vmem:[%s2696_s29 + $0x3b] sm:$0x1] %vm2684_vm2, %v3589_v55  ;;  %1163 = vst.msk [vmem:[%s2696_s29 + $0x35] sm:$0x1] %vm2684_vm2, %v3595_v50  ;;  %v4589_v55 = vcombine.high %v2959_v19, %v2959_v19  ;;  %v3685_v19 = vcombine.high %v3012_v11, %v3012_v11 }
 0x28a   : > { %4587 = vst [vmem:[#allocation41_spill] sm:$0xff] %v3655_v34  ;;  %4588 = vst [vmem:[#allocation42_spill] sm:$0xff] %v3659_v33  ;;  %1216 = vrot.lane.b32.xlu1 %v3203_v61, %s2567_s26  ;;  %v4600_v61 = vld [vmem:[#allocation18_spill] sm:$0xff] }
 0x28b   : > { %v3665_v17 = vrot.slane %v4589_v55, %v2677_v49  ;;  %1164 = vst.msk [vmem:[%s2696_s29 + $0x39] sm:$0x1] %vm2684_vm2, %v3617_v36  ;;  %1181 = vst.msk [vmem:[%s2696_s29 + $0x7d] sm:$0x1] %vm2684_vm2, %v3621_v8  ;;  %v3689_v55 = vcombine.high %v2983_v45, %v2983_v45  ;;  %2144 = vrot.lane.b32.xlu0 %v4596_v4, %s2567_s26 }
 0x28c   : > { %2091 = vst.msk [vmem:[%s2696_s29 + $0x3f] sm:$0x1] %vm2684_vm2, %v3625_v56  ;;  %1631 = vst.msk [vmem:[%s2696_s29 + $0x4a] sm:$0x1] %vm2684_vm2, %v3629_v0  ;;  %v3699_v56 = vcombine.high %v3046_v10, %v3046_v10 }
 0x28d   : > { %1165 = vst.msk [vmem:[%s2696_s29 + $0x3d] sm:$0x1] %vm2684_vm2, %v3651_v37  ;;  %1632 = vst.msk [vmem:[%s2696_s29 + $0x4e] sm:$0x1] %vm2684_vm2, %v3655_v34  ;;  %v3719_v40 = vcombine.high %v3665_v17, %v3665_v17  ;;  %v3727_v34 = vcombine.high %v3072_v29, %v3072_v29 }
 0x28e   : > { %1615 = vst.msk [vmem:[%s2696_s29 + $0xa] sm:$0x1] %vm2684_vm2, %v3659_v33  ;;  %1634 = vst.msk [vmem:[%s2696_s29 + $0x56] sm:$0x1] %vm2684_vm2, %v3665_v17  ;;  %v4593_v33 = vcombine.high %v3027_v22, %v3027_v22  ;;  %v3763_v22 = vcombine.high %v3078_v6, %v3078_v6  ;;  %2110 = vrot.lane.b32.xlu1 %v3220_v42, %s2567_s26  ;;  %v4607_v42 = vld [vmem:[#allocation22_spill] sm:$0xff] }
 0x28f   : > { %4591 = vst [vmem:[#allocation43_spill] sm:$0xff] %v3719_v40  ;;  %4592 = vst [vmem:[#allocation44_spill] sm:$0xff] %v3723_v63  ;;  %2148 = vrot.lane.b32.xlu0 %v3224_v28, %s2567_s26  ;;  %v4608_v28 = vld [vmem:[#allocation23_spill] sm:$0xff] }
 0x290   : > { %v3733_v10 = vrot.slane %v4593_v33, %v2677_v49  ;;  %1616 = vst.msk [vmem:[%s2696_s29 + $0xe] sm:$0x1] %vm2684_vm2, %v3685_v19  ;;  %1635 = vst.msk [vmem:[%s2696_s29 + $0x5a] sm:$0x1] %vm2684_vm2, %v3689_v55  ;;  %v3755_v49 = vcombine.high %v3695_v58, %v3695_v58  ;;  %v3767_v33 = vcombine.high %v3075_v46, %v3075_v46 }
 0x291   : > { %1618 = vst.msk [vmem:[%s2696_s29 + $0x16] sm:$0x1] %vm2684_vm2, %v3695_v58  ;;  %1639 = vst.msk [vmem:[%s2696_s29 + $0x6a] sm:$0x1] %vm2684_vm2, %v3699_v56 }
 0x292   : > { %1636 = vst.msk [vmem:[%s2696_s29 + $0x5e] sm:$0x1] %vm2684_vm2, %v3719_v40  ;;  %1619 = vst.msk [vmem:[%s2696_s29 + $0x1a] sm:$0x1] %vm2684_vm2, %v3723_v63  ;;  %v3793_v46 = vcombine.high %v3733_v10, %v3733_v10  ;;  %v3797_v40 = vcombine.high %v3104_v14, %v3104_v14  ;;  %v3801_v63 = vcombine.high %v3449_v53, %v3449_v53  ;;  %1184 = vrot.lane.b32.xlu1 %v3230_v1, %s2567_s26 }
 0x293   : > { %1640 = vst.msk [vmem:[%s2696_s29 + $0x6e] sm:$0x1] %vm2684_vm2, %v3727_v34  ;;  %1642 = vst.msk [vmem:[%s2696_s29 + $0x76] sm:$0x1] %vm2684_vm2, %v3733_v10  ;;  %2156 = vrot.lane.b32.xlu0 %v3168_v25, %s2567_s26 }
 0x294   : > { %1620 = vst.msk [vmem:[%s2696_s29 + $0x1e] sm:$0x1] %vm2684_vm2, %v3755_v49  ;;  %1643 = vst.msk [vmem:[%s2696_s29 + $0x7a] sm:$0x1] %vm2684_vm2, %v3759_v38 }
 0x295   : > { %1624 = vst.msk [vmem:[%s2696_s29 + $0x2e] sm:$0x1] %vm2684_vm2, %v3763_v22  ;;  %1627 = vst.msk [vmem:[%s2696_s29 + $0x3a] sm:$0x1] %vm2684_vm2, %v3767_v33 }
 0x296   : > { %2106 = vst.msk [vmem:[%s2696_s29 + $0x7b] sm:$0x1] %vm2684_vm2, %v3789_v39  ;;  %1644 = vst.msk [vmem:[%s2696_s29 + $0x7e] sm:$0x1] %vm2684_vm2, %v3793_v46  ;;  %2146 = vrot.lane.b32.xlu1 %v4597_v51, %s2567_s26 }
 0x297   : > { %1628 = vst.msk [vmem:[%s2696_s29 + $0x3e] sm:$0x1] %vm2684_vm2, %v3797_v40  ;;  %2107 = vst.msk [vmem:[%s2696_s29 + $0x7f] sm:$0x1] %vm2684_vm2, %v3801_v63  ;;  %1218 = vrot.lane.b32.xlu0 %v4598_v54, %s2567_s26 }
 0x29a   : > { %2150 = vrot.lane.b32.xlu1 %v3251_v30, %s2567_s26 }
 0x29b   : > { %1222 = vrot.lane.b32.xlu0 %v3255_v13, %s2567_s26  ;;  %v4609_v13 = vld [vmem:[#allocation24_spill] sm:$0xff] }
 0x29e   : > { %2158 = vrot.lane.b32.xlu1 %v4599_v60, %s2567_s26 }
 0x29f   : > { %1230 = vrot.lane.b32.xlu0 %v2916_v62, %s2567_s26  ;;  %v4602_v62 = vlaneseq }
 0x2a1   : > { %vm812_vm3 = vcmp.ge.s32.totalorder %v4602_v62, 64  ;;  %vm813_vm4 = vcmp.lt.s32.totalorder %v4602_v62, 128  ;;  %v4616_v62 = vld [vmem:[#allocation31_spill] sm:$0xff] }
 0x2a2   : > { %1220 = vrot.lane.b32.xlu1 %v4600_v61, %s2567_s26  ;;  %vm3901_vm5 = vmand %vm812_vm3, %vm813_vm4  ;;  %v4614_v61 = vld [vmem:[#allocation29_spill] sm:$0xff] }
 0x2a3   : > { %2112 = vrot.lane.b32.xlu0 %v4601_v24, %s2567_s26 }
 0x2a6   : > { %1224 = vrot.lane.b32.xlu1 %v3288_v2, %s2567_s26  ;;  %v4604_v2 = vld [vmem:[#allocation21_spill] sm:$0xff] }
 0x2a7   : > { %2116 = vrot.lane.b32.xlu0 %v3307_v48, %s2567_s26 }
 0x2aa   : > { %1232 = vrot.lane.b32.xlu1 %v3313_v41, %s2567_s26 }
 0x2ab   : > { %2124 = vrot.lane.b32.xlu0 %v3182_v59, %s2567_s26 }
 0x2ae   : > { %2114 = vrot.lane.b32.xlu1 %v4603_v23, %s2567_s26  ;;  %v4617_v23 = vld [vmem:[#allocation32_spill] sm:$0xff] }
 0x2af   : > { %1186 = vrot.lane.b32.xlu0 %v4604_v2, %s2567_s26 }
 0x2b1   : > { %v749_v9 = vpop.permute.xlu0 %748 }
 0x2b2   : > { %2118 = vrot.lane.b32.xlu1 %v3342_v31, %s2567_s26  ;;  %831 = vst.msk [vmem:[%s2696_s29 + $0x40] sm:$0x1] %vm3901_vm5, %v749_v9 }
 0x2b3   : > { %1190 = vrot.lane.b32.xlu0 %v3346_v47, %s2567_s26 }
 0x2b4   : > { %v751_v15 = vpop.permute.xlu1 %750 }
 0x2b5   : > { %832 = vst.msk [vmem:[%s2696_s29 + $0x44] sm:$0x1] %vm3901_vm5, %v751_v15  ;;  %v717_v59 = vpop.permute.xlu0 %716 }
 0x2b6   : > { %2126 = vrot.lane.b32.xlu1 %v3349_v7, %s2567_s26  ;;  %815 = vst.msk [vmem:[%s2696_s29] sm:$0x1] %vm3901_vm5, %v717_v59  ;;  %v4610_v7 = vld [vmem:[#allocation25_spill] sm:$0xff] }
 0x2b7   : > { %1198 = vrot.lane.b32.xlu0 %v2956_v18, %s2567_s26 }
 0x2b8   : > { %v719_v12 = vpop.permute.xlu1 %718 }
 0x2b9   : > { %816 = vst.msk [vmem:[%s2696_s29 + $0x4] sm:$0x1] %vm3901_vm5, %v719_v12  ;;  %v753_v1 = vpop.permute.xlu0 %752  ;;  %v4618_v12 = vld [vmem:[#allocation33_spill] sm:$0xff] }
 0x2ba   : > { %1188 = vrot.lane.b32.xlu1 %v4607_v42, %s2567_s26  ;;  %833 = vst.msk [vmem:[%s2696_s29 + $0x48] sm:$0x1] %vm3901_vm5, %v753_v1  ;;  %v4620_v42 = vld [vmem:[#allocation35_spill] sm:$0xff] }
 0x2bb   : > { %2152 = vrot.lane.b32.xlu0 %v4608_v28, %s2567_s26  ;;  %v4621_v28 = vld [vmem:[#allocation36_spill] sm:$0xff] }
 0x2bc   : > { %v721_v30 = vpop.permute.xlu1 %720 }
 0x2bd   : > { %817 = vst.msk [vmem:[%s2696_s29 + $0x8] sm:$0x1] %vm3901_vm5, %v721_v30  ;;  %v757_v18 = vpop.permute.xlu0 %756 }
 0x2be   : > { %1192 = vrot.lane.b32.xlu1 %v3381_v27, %s2567_s26  ;;  %835 = vst.msk [vmem:[%s2696_s29 + $0x50] sm:$0x1] %vm3901_vm5, %v757_v18 }
 0x2bf   : > { %2160 = vrot.lane.b32.xlu0 %v4609_v13, %s2567_s26 }
 0x2c0   : > { %v755_v48 = vpop.permute.xlu1 %754 }
 0x2c1   : > { %834 = vst.msk [vmem:[%s2696_s29 + $0x4c] sm:$0x1] %vm3901_vm5, %v755_v48  ;;  %v765_v41 = vpop.permute.xlu0 %764 }
 0x2c2   : > { %1200 = vrot.lane.b32.xlu1 %v3391_v43, %s2567_s26  ;;  %839 = vst.msk [vmem:[%s2696_s29 + $0x60] sm:$0x1] %vm3901_vm5, %v765_v41  ;;  %v4611_v43 = vld [vmem:[#allocation26_spill] sm:$0xff] }
 0x2c3   : > { %2164 = vrot.lane.b32.xlu0 %v3411_v52, %s2567_s26 }
 0x2c4   : > { %v759_v31 = vpop.permute.xlu1 %758 }
 0x2c5   : > { %836 = vst.msk [vmem:[%s2696_s29 + $0x54] sm:$0x1] %vm3901_vm5, %v759_v31  ;;  %v725_v47 = vpop.permute.xlu0 %724  ;;  %v4623_v31 = vld [vmem:[#allocation38_spill] sm:$0xff] }
 0x2c6   : > { %2154 = vrot.lane.b32.xlu1 %v4610_v7, %s2567_s26  ;;  %819 = vst.msk [vmem:[%s2696_s29 + $0x10] sm:$0x1] %vm3901_vm5, %v725_v47 }
 0x2c7   : > { %1226 = vrot.lane.b32.xlu0 %v4611_v43, %s2567_s26 }
 0x2c8   : > { %v767_v27 = vpop.permute.xlu1 %766 }
 0x2c9   : > { %840 = vst.msk [vmem:[%s2696_s29 + $0x64] sm:$0x1] %vm3901_vm5, %v767_v27  ;;  %v733_v52 = vpop.permute.xlu0 %732 }
 0x2ca   : > { %2162 = vrot.lane.b32.xlu1 %v4612_v57, %s2567_s26  ;;  %823 = vst.msk [vmem:[%s2696_s29 + $0x20] sm:$0x1] %vm3901_vm5, %v733_v52  ;;  %v4626_v57 = vld [vmem:[#allocation40_spill] sm:$0xff] }
 0x2cb   : > { %1234 = vrot.lane.b32.xlu0 %v4613_v44, %s2567_s26 }
 0x2cc   : > { %v723_v4 = vpop.permute.xlu1 %722 }
 0x2cd   : > { %818 = vst.msk [vmem:[%s2696_s29 + $0xc] sm:$0x1] %vm3901_vm5, %v723_v4  ;;  %v761_v51 = vpop.permute.xlu0 %760 }
 0x2ce   : > { %2166 = vrot.lane.b32.xlu1 %v3449_v53, %s2567_s26  ;;  %837 = vst.msk [vmem:[%s2696_s29 + $0x58] sm:$0x1] %vm3901_vm5, %v761_v51  ;;  %v4615_v53 = vld [vmem:[#allocation30_spill] sm:$0xff] }
 0x2cf   : > { %1238 = vrot.lane.b32.xlu0 %v3453_v20, %s2567_s26 }
 0x2d0   : > { %v727_v54 = vpop.permute.xlu1 %726 }
 0x2d1   : > { %820 = vst.msk [vmem:[%s2696_s29 + $0x14] sm:$0x1] %vm3901_vm5, %v727_v54  ;;  %v769_v60 = vpop.permute.xlu0 %768 }
 0x2d2   : > { %1228 = vrot.lane.b32.xlu1 %v4614_v61, %s2567_s26  ;;  %841 = vst.msk [vmem:[%s2696_s29 + $0x68] sm:$0x1] %vm3901_vm5, %v769_v60  ;;  %v4628_v60 = vld [vmem:[#allocation7_spill] sm:$0xff]  ;;  %v4629_v61 = vld [vmem:[#allocation8_spill] sm:$0xff] }
 0x2d3   : > { %2120 = vrot.lane.b32.xlu0 %v4615_v53, %s2567_s26 }
 0x2d4   : > { %v735_v24 = vpop.permute.xlu1 %734 }
 0x2d5   : > { %824 = vst.msk [vmem:[%s2696_s29 + $0x24] sm:$0x1] %vm3901_vm5, %v735_v24  ;;  %v773_v20 = vpop.permute.xlu0 %772  ;;  %v4630_v24 = vld [vmem:[#allocation41_spill] sm:$0xff] }
 0x2d6   : > { %1236 = vrot.lane.b32.xlu1 %v4616_v62, %s2567_s26  ;;  %843 = vst.msk [vmem:[%s2696_s29 + $0x70] sm:$0x1] %vm3901_vm5, %v773_v20 }
 0x2d7   : > { %2128 = vrot.lane.b32.xlu0 %v4617_v23, %s2567_s26 }
 0x2d8   : > { %v763_v2 = vpop.permute.xlu1 %762 }
 0x2d9   : > { %838 = vst.msk [vmem:[%s2696_s29 + $0x5c] sm:$0x1] %vm3901_vm5, %v763_v2  ;;  %v729_v9 = vpop.permute.xlu0 %728 }
 0x2da   : > { %1240 = vrot.lane.b32.xlu1 %v3493_v3, %s2567_s26  ;;  %821 = vst.msk [vmem:[%s2696_s29 + $0x18] sm:$0x1] %vm3901_vm5, %v729_v9  ;;  %v4619_v3 = vld [vmem:[#allocation34_spill] sm:$0xff] }
 0x2db   : > { %2132 = vrot.lane.b32.xlu0 %v3515_v35, %s2567_s26 }
 0x2dc   : > { %v771_v15 = vpop.permute.xlu1 %770 }
 0x2dd   : > { %842 = vst.msk [vmem:[%s2696_s29 + $0x6c] sm:$0x1] %vm3901_vm5, %v771_v15  ;;  %v737_v59 = vpop.permute.xlu0 %736 }
 0x2de   : > { %2122 = vrot.lane.b32.xlu1 %v4618_v12, %s2567_s26  ;;  %825 = vst.msk [vmem:[%s2696_s29 + $0x28] sm:$0x1] %vm3901_vm5, %v737_v59  ;;  %v4633_v59 = vld [vmem:[#allocation43_spill] sm:$0xff] }
 0x2df   : > { %1194 = vrot.lane.b32.xlu0 %v4619_v3, %s2567_s26  ;;  %v4635_v3 = vld [vmem:[#allocation11_spill] sm:$0xff] }
 0x2e0   : > { %v775_v1 = vpop.permute.xlu1 %774 }
 0x2e1   : > { %844 = vst.msk [vmem:[%s2696_s29 + $0x74] sm:$0x1] %vm3901_vm5, %v775_v1  ;;  %v741_v35 = vpop.permute.xlu0 %740 }
 0x2e2   : > { %2130 = vrot.lane.b32.xlu1 %v4620_v42, %s2567_s26  ;;  %827 = vst.msk [vmem:[%s2696_s29 + $0x30] sm:$0x1] %vm3901_vm5, %v741_v35 }
 0x2e3   : > { %1202 = vrot.lane.b32.xlu0 %v4621_v28, %s2567_s26 }
 0x2e4   : > { %v731_v30 = vpop.permute.xlu1 %730 }
 0x2e5   : > { %822 = vst.msk [vmem:[%s2696_s29 + $0x1c] sm:$0x1] %vm3901_vm5, %v731_v30  ;;  %v777_v18 = vpop.permute.xlu0 %776 }
 0x2e6   : > { %2134 = vrot.lane.b32.xlu1 %v3553_v26, %s2567_s26  ;;  %845 = vst.msk [vmem:[%s2696_s29 + $0x78] sm:$0x1] %vm3901_vm5, %v777_v18  ;;  %v4622_v26 = vld [vmem:[#allocation37_spill] sm:$0xff] }
 0x2e7   : > { %1206 = vrot.lane.b32.xlu0 %v3557_v32, %s2567_s26 }
 0x2e8   : > { %v739_v13 = vpop.permute.xlu1 %738 }
 0x2e9   : > { %826 = vst.msk [vmem:[%s2696_s29 + $0x2c] sm:$0x1] %vm3901_vm5, %v739_v13  ;;  %v745_v48 = vpop.permute.xlu0 %744 }
 0x2ea   : > { %1196 = vrot.lane.b32.xlu1 %v3561_v16, %s2567_s26  ;;  %829 = vst.msk [vmem:[%s2696_s29 + $0x38] sm:$0x1] %vm3901_vm5, %v745_v48  ;;  %v4624_v16 = vld [vmem:[#allocation39_spill] sm:$0xff] }
 0x2eb   : > { %1242 = vrot.lane.b32.xlu0 %v4622_v26, %s2567_s26 }
 0x2ec   : > { %v743_v41 = vpop.permute.xlu1 %742 }
 0x2ed   : > { %828 = vst.msk [vmem:[%s2696_s29 + $0x34] sm:$0x1] %vm3901_vm5, %v743_v41  ;;  %v2141_v32 = vpop.permute.xlu0 %2140 }
 0x2ee   : > { %1204 = vrot.lane.b32.xlu1 %v4623_v31, %s2567_s26  ;;  %2220 = vst.msk [vmem:[%s2696_s29 + $0x43] sm:$0x1] %vm3901_vm5, %v2141_v32 }
 0x2ef   : > { %2136 = vrot.lane.b32.xlu0 %v4624_v16, %s2567_s26 }
 0x2f0   : > { %v779_v47 = vpop.permute.xlu1 %778 }
 0x2f1   : > { %846 = vst.msk [vmem:[%s2696_s29 + $0x7c] sm:$0x1] %vm3901_vm5, %v779_v47  ;;  %v1215_v7 = vpop.permute.xlu0 %1214 }
 0x2f2   : > { %1208 = vrot.lane.b32.xlu1 %v3595_v50, %s2567_s26  ;;  %1294 = vst.msk [vmem:[%s2696_s29 + $0x41] sm:$0x1] %vm3901_vm5, %v1215_v7  ;;  %v4625_v50 = vld [vmem:[#allocation5_spill] sm:$0xff] }
 0x2f3   : > { %1210 = vrot.lane.b32.xlu0 %v3617_v36, %s2567_s26 }
 0x2f4   : > { %v747_v43 = vpop.permute.xlu1 %746 }
 0x2f5   : > { %830 = vst.msk [vmem:[%s2696_s29 + $0x3c] sm:$0x1] %vm3901_vm5, %v747_v43  ;;  %v2109_v27 = vpop.permute.xlu0 %2108 }
 0x2f6   : > { %1244 = vrot.lane.b32.xlu1 %v3621_v8, %s2567_s26  ;;  %2204 = vst.msk [vmem:[%s2696_s29 + $0x3] sm:$0x1] %vm3901_vm5, %v2109_v27  ;;  %v4627_v8 = vld [vmem:[#allocation6_spill] sm:$0xff] }
 0x2f7   : > { %1677 = vrot.lane.b32.xlu0 %v4625_v50, %s2567_s26 }
 0x2f8   : > { %v2143_v52 = vpop.permute.xlu1 %2142 }
 0x2f9   : > { %2221 = vst.msk [vmem:[%s2696_s29 + $0x47] sm:$0x1] %vm3901_vm5, %v2143_v52  ;;  %v1183_v36 = vpop.permute.xlu0 %1182 }
 0x2fa   : > { %2138 = vrot.lane.b32.xlu1 %v4626_v57, %s2567_s26  ;;  %1278 = vst.msk [vmem:[%s2696_s29 + $0x1] sm:$0x1] %vm3901_vm5, %v1183_v36 }
 0x2fb   : > { %1645 = vrot.lane.b32.xlu0 %v4627_v8, %s2567_s26 }
 0x2fc   : > { %v1217_v44 = vpop.permute.xlu1 %1216 }
 0x2fd   : > { %1295 = vst.msk [vmem:[%s2696_s29 + $0x45] sm:$0x1] %vm3901_vm5, %v1217_v44  ;;  %v2145_v4 = vpop.permute.xlu0 %2144 }
 0x2fe   : > { %1212 = vrot.lane.b32.xlu1 %v3651_v37, %s2567_s26  ;;  %2222 = vst.msk [vmem:[%s2696_s29 + $0x4b] sm:$0x1] %vm3901_vm5, %v2145_v4 }
 0x2ff   : > { %1681 = vrot.lane.b32.xlu0 %v3629_v0, %s2567_s26 }
 0x300   : > { %v2111_v51 = vpop.permute.xlu1 %2110 }
 0x301   : > { %2205 = vst.msk [vmem:[%s2696_s29 + $0x7] sm:$0x1] %vm3901_vm5, %v2111_v51  ;;  %v2149_v54 = vpop.permute.xlu0 %2148 }
 0x302   : > { %1679 = vrot.lane.b32.xlu1 %v4628_v60, %s2567_s26  ;;  %2224 = vst.msk [vmem:[%s2696_s29 + $0x53] sm:$0x1] %vm3901_vm5, %v2149_v54 }
 0x303   : > { %1685 = vrot.lane.b32.xlu0 %v2983_v45, %s2567_s26 }
 0x304   : > { %v1185_v37 = vpop.permute.xlu1 %1184 }
 0x305   : > { %1279 = vst.msk [vmem:[%s2696_s29 + $0x5] sm:$0x1] %vm3901_vm5, %v1185_v37  ;;  %v2157_v0 = vpop.permute.xlu0 %2156 }
 0x306   : > { %1647 = vrot.lane.b32.xlu1 %v3012_v11, %s2567_s26  ;;  %2228 = vst.msk [vmem:[%s2696_s29 + $0x63] sm:$0x1] %vm3901_vm5, %v2157_v0  ;;  %v4631_v11 = vld [vmem:[#allocation42_spill] sm:$0xff] }
 0x307   : > { %1693 = vrot.lane.b32.xlu0 %v4629_v61, %s2567_s26 }
 0x308   : > { %v2147_v53 = vpop.permute.xlu1 %2146 }
 0x309   : > { %2223 = vst.msk [vmem:[%s2696_s29 + $0x4f] sm:$0x1] %vm3901_vm5, %v2147_v53  ;;  %v1219_v45 = vpop.permute.xlu0 %1218 }
 0x30a   : > { %1683 = vrot.lane.b32.xlu1 %v4630_v24, %s2567_s26  ;;  %1296 = vst.msk [vmem:[%s2696_s29 + $0x49] sm:$0x1] %vm3901_vm5, %v1219_v45 }
 0x30b   : > { %1649 = vrot.lane.b32.xlu0 %v4631_v11, %s2567_s26 }
 0x30c   : > { %v2151_v20 = vpop.permute.xlu1 %2150 }
 0x30d   : > { %2225 = vst.msk [vmem:[%s2696_s29 + $0x57] sm:$0x1] %vm3901_vm5, %v2151_v20  ;;  %v1223_v62 = vpop.permute.xlu0 %1222 }
 0x30e   : > { %1687 = vrot.lane.b32.xlu1 %v3665_v17, %s2567_s26  ;;  %1298 = vst.msk [vmem:[%s2696_s29 + $0x51] sm:$0x1] %vm3901_vm5, %v1223_v62  ;;  %v4632_v17 = vld [vmem:[#allocation9_spill] sm:$0xff] }
 0x30f   : > { %1653 = vrot.lane.b32.xlu0 %v3003_v5, %s2567_s26 }
 0x310   : > { %v2159_v23 = vpop.permute.xlu1 %2158 }
 0x311   : > { %2229 = vst.msk [vmem:[%s2696_s29 + $0x67] sm:$0x1] %vm3901_vm5, %v2159_v23  ;;  %v1231_v2 = vpop.permute.xlu0 %1230 }
 0x312   : > { %1695 = vrot.lane.b32.xlu1 %v3072_v29, %s2567_s26  ;;  %1302 = vst.msk [vmem:[%s2696_s29 + $0x61] sm:$0x1] %vm3901_vm5, %v1231_v2 }
 0x313   : > { %1661 = vrot.lane.b32.xlu0 %v4632_v17, %s2567_s26 }
 0x314   : > { %v1221_v9 = vpop.permute.xlu1 %1220 }
 0x315   : > { %1297 = vst.msk [vmem:[%s2696_s29 + $0x4d] sm:$0x1] %vm3901_vm5, %v1221_v9  ;;  %v2113_v5 = vpop.permute.xlu0 %2112 }
 0x316   : > { %1651 = vrot.lane.b32.xlu1 %v3685_v19, %s2567_s26  ;;  %2206 = vst.msk [vmem:[%s2696_s29 + $0xb] sm:$0x1] %vm3901_vm5, %v2113_v5 }
 0x317   : > { %1689 = vrot.lane.b32.xlu0 %v3689_v55, %s2567_s26 }
 0x318   : > { %v1225_v29 = vpop.permute.xlu1 %1224 }
 0x319   : > { %1299 = vst.msk [vmem:[%s2696_s29 + $0x55] sm:$0x1] %vm3901_vm5, %v1225_v29  ;;  %v2117_v15 = vpop.permute.xlu0 %2116 }
 0x31a   : > { %1655 = vrot.lane.b32.xlu1 %v3695_v58, %s2567_s26  ;;  %2208 = vst.msk [vmem:[%s2696_s29 + $0x13] sm:$0x1] %vm3901_vm5, %v2117_v15 }
 0x31b   : > { %1697 = vrot.lane.b32.xlu0 %v3699_v56, %s2567_s26 }
 0x31c   : > { %v1233_v19 = vpop.permute.xlu1 %1232 }
 0x31d   : > { %1303 = vst.msk [vmem:[%s2696_s29 + $0x65] sm:$0x1] %vm3901_vm5, %v1233_v19  ;;  %v2125_v55 = vpop.permute.xlu0 %2124 }
 0x31e   : > { %1663 = vrot.lane.b32.xlu1 %v3078_v6, %s2567_s26  ;;  %2212 = vst.msk [vmem:[%s2696_s29 + $0x23] sm:$0x1] %vm3901_vm5, %v2125_v55  ;;  %v4634_v6 = vld [vmem:[#allocation44_spill] sm:$0xff] }
 0x31f   : > { %1701 = vrot.lane.b32.xlu0 %v3057_v21, %s2567_s26 }
 0x320   : > { %v2115_v58 = vpop.permute.xlu1 %2114 }
 0x321   : > { %2207 = vst.msk [vmem:[%s2696_s29 + $0xf] sm:$0x1] %vm3901_vm5, %v2115_v58  ;;  %v1187_v56 = vpop.permute.xlu0 %1186 }
 0x322   : > { %1691 = vrot.lane.b32.xlu1 %v4633_v59, %s2567_s26  ;;  %1280 = vst.msk [vmem:[%s2696_s29 + $0x9] sm:$0x1] %vm3901_vm5, %v1187_v56 }
 0x323   : > { %1657 = vrot.lane.b32.xlu0 %v4634_v6, %s2567_s26 }
 0x324   : > { %v2119_v12 = vpop.permute.xlu1 %2118 }
 0x325   : > { %2209 = vst.msk [vmem:[%s2696_s29 + $0x17] sm:$0x1] %vm3901_vm5, %v2119_v12  ;;  %v1191_v21 = vpop.permute.xlu0 %1190 }
 0x326   : > { %1699 = vrot.lane.b32.xlu1 %v3727_v34, %s2567_s26  ;;  %1282 = vst.msk [vmem:[%s2696_s29 + $0x11] sm:$0x1] %vm3901_vm5, %v1191_v21  ;;  %v4636_v34 = vld [vmem:[#allocation10_spill] sm:$0xff] }
 0x327   : > { %1665 = vrot.lane.b32.xlu0 %v4635_v3, %s2567_s26 }
 0x328   : > { %v2127_v1 = vpop.permute.xlu1 %2126 }
 0x329   : > { %2213 = vst.msk [vmem:[%s2696_s29 + $0x27] sm:$0x1] %vm3901_vm5, %v2127_v1  ;;  %v1199_v35 = vpop.permute.xlu0 %1198 }
 0x32a   : > { %1703 = vrot.lane.b32.xlu1 %v3733_v10, %s2567_s26  ;;  %1286 = vst.msk [vmem:[%s2696_s29 + $0x21] sm:$0x1] %vm3901_vm5, %v1199_v35 }
 0x32b   : > { %1669 = vrot.lane.b32.xlu0 %v4636_v34, %s2567_s26 }
 0x32c   : > { %v1189_v42 = vpop.permute.xlu1 %1188 }
 0x32d   : > { %1281 = vst.msk [vmem:[%s2696_s29 + $0xd] sm:$0x1] %vm3901_vm5, %v1189_v42  ;;  %v2153_v28 = vpop.permute.xlu0 %2152 }
 0x32e   : > { %1659 = vrot.lane.b32.xlu1 %v3755_v49, %s2567_s26  ;;  %2226 = vst.msk [vmem:[%s2696_s29 + $0x5b] sm:$0x1] %vm3901_vm5, %v2153_v28 }
 0x32f   : > { %1705 = vrot.lane.b32.xlu0 %v3759_v38, %s2567_s26 }
 0x330   : > { %v1193_v10 = vpop.permute.xlu1 %1192 }
 0x331   : > { %1283 = vst.msk [vmem:[%s2696_s29 + $0x15] sm:$0x1] %vm3901_vm5, %v1193_v10  ;;  %v2161_v30 = vpop.permute.xlu0 %2160 }
 0x332   : > { %1667 = vrot.lane.b32.xlu1 %v3763_v22, %s2567_s26  ;;  %2230 = vst.msk [vmem:[%s2696_s29 + $0x6b] sm:$0x1] %vm3901_vm5, %v2161_v30 }
 0x333   : > { %1673 = vrot.lane.b32.xlu0 %v3767_v33, %s2567_s26 }
 0x334   : > { %v1201_v49 = vpop.permute.xlu1 %1200 }
 0x335   : > { %1287 = vst.msk [vmem:[%s2696_s29 + $0x25] sm:$0x1] %vm3901_vm5, %v1201_v49  ;;  %v2165_v38 = vpop.permute.xlu0 %2164 }
 0x336   : > { %1671 = vrot.lane.b32.xlu1 %v3104_v14, %s2567_s26  ;;  %2232 = vst.msk [vmem:[%s2696_s29 + $0x73] sm:$0x1] %vm3901_vm5, %v2165_v38 }
 0x337   : > { %2168 = vrot.lane.b32.xlu0 %v3789_v39, %s2567_s26 }
 0x338   : > { %v2155_v22 = vpop.permute.xlu1 %2154 }
 0x339   : > { %2227 = vst.msk [vmem:[%s2696_s29 + $0x5f] sm:$0x1] %vm3901_vm5, %v2155_v22  ;;  %v1227_v33 = vpop.permute.xlu0 %1226 }
 0x33a   : > { %1707 = vrot.lane.b32.xlu1 %v3793_v46, %s2567_s26  ;;  %1300 = vst.msk [vmem:[%s2696_s29 + $0x59] sm:$0x1] %vm3901_vm5, %v1227_v33 }
 0x33c   : > { %v2163_v14 = vpop.permute.xlu1 %2162 }
 0x33d   : > { %2231 = vst.msk [vmem:[%s2696_s29 + $0x6f] sm:$0x1] %vm3901_vm5, %v2163_v14  ;;  %v1235_v39 = vpop.permute.xlu0 %1234 }
 0x33e   : > { %1675 = vrot.lane.b32.xlu1 %v3797_v40, %s2567_s26  ;;  %1304 = vst.msk [vmem:[%s2696_s29 + $0x69] sm:$0x1] %vm3901_vm5, %v1235_v39 }
 0x340   : > { %v2167_v18 = vpop.permute.xlu1 %2166 }
 0x341   : > { %2233 = vst.msk [vmem:[%s2696_s29 + $0x77] sm:$0x1] %vm3901_vm5, %v2167_v18  ;;  %v1239_v46 = vpop.permute.xlu0 %1238 }
 0x342   : > { %2170 = vrot.lane.b32.xlu1 %v3801_v63, %s2567_s26  ;;  %1306 = vst.msk [vmem:[%s2696_s29 + $0x71] sm:$0x1] %vm3901_vm5, %v1239_v46 }
 0x344   : > { %v1229_v13 = vpop.permute.xlu1 %1228 }
 0x345   : > { %1301 = vst.msk [vmem:[%s2696_s29 + $0x5d] sm:$0x1] %vm3901_vm5, %v1229_v13  ;;  %v2121_v40 = vpop.permute.xlu0 %2120 }
 0x346   : > { %2210 = vst.msk [vmem:[%s2696_s29 + $0x1b] sm:$0x1] %vm3901_vm5, %v2121_v40 }
 0x348   : > { %v1237_v48 = vpop.permute.xlu1 %1236 }
 0x349   : > { %1305 = vst.msk [vmem:[%s2696_s29 + $0x6d] sm:$0x1] %vm3901_vm5, %v1237_v48  ;;  %v2129_v63 = vpop.permute.xlu0 %2128 }
 0x34a   : > { %2214 = vst.msk [vmem:[%s2696_s29 + $0x2b] sm:$0x1] %vm3901_vm5, %v2129_v63 }
 0x34c   : > { %v1241_v26 = vpop.permute.xlu1 %1240 }
 0x34d   : > { %1307 = vst.msk [vmem:[%s2696_s29 + $0x75] sm:$0x1] %vm3901_vm5, %v1241_v26  ;;  %v2133_v41 = vpop.permute.xlu0 %2132 }
 0x34e   : > { %2216 = vst.msk [vmem:[%s2696_s29 + $0x33] sm:$0x1] %vm3901_vm5, %v2133_v41 }
 0x350   : > { %v2123_v32 = vpop.permute.xlu1 %2122 }
 0x351   : > { %2211 = vst.msk [vmem:[%s2696_s29 + $0x1f] sm:$0x1] %vm3901_vm5, %v2123_v32  ;;  %v1195_v31 = vpop.permute.xlu0 %1194 }
 0x352   : > { %1284 = vst.msk [vmem:[%s2696_s29 + $0x19] sm:$0x1] %vm3901_vm5, %v1195_v31 }
 0x354   : > { %v2131_v16 = vpop.permute.xlu1 %2130 }
 0x355   : > { %2215 = vst.msk [vmem:[%s2696_s29 + $0x2f] sm:$0x1] %vm3901_vm5, %v2131_v16  ;;  %v1203_v47 = vpop.permute.xlu0 %1202 }
 0x356   : > { %1288 = vst.msk [vmem:[%s2696_s29 + $0x29] sm:$0x1] %vm3901_vm5, %v1203_v47 }
 0x358   : > { %v2135_v7 = vpop.permute.xlu1 %2134 }
 0x359   : > { %2217 = vst.msk [vmem:[%s2696_s29 + $0x37] sm:$0x1] %vm3901_vm5, %v2135_v7  ;;  %v1207_v43 = vpop.permute.xlu0 %1206 }
 0x35a   : > { %1290 = vst.msk [vmem:[%s2696_s29 + $0x31] sm:$0x1] %vm3901_vm5, %v1207_v43 }
 0x35c   : > { %v1197_v27 = vpop.permute.xlu1 %1196 }
 0x35d   : > { %1285 = vst.msk [vmem:[%s2696_s29 + $0x1d] sm:$0x1] %vm3901_vm5, %v1197_v27  ;;  %v1243_v50 = vpop.permute.xlu0 %1242 }
 0x35e   : > { %1308 = vst.msk [vmem:[%s2696_s29 + $0x79] sm:$0x1] %vm3901_vm5, %v1243_v50 }
 0x360   : > { %v1205_v52 = vpop.permute.xlu1 %1204 }
 0x361   : > { %1289 = vst.msk [vmem:[%s2696_s29 + $0x2d] sm:$0x1] %vm3901_vm5, %v1205_v52  ;;  %v2137_v36 = vpop.permute.xlu0 %2136 }
 0x362   : > { %2218 = vst.msk [vmem:[%s2696_s29 + $0x3b] sm:$0x1] %vm3901_vm5, %v2137_v36 }
 0x364   : > { %v1209_v57 = vpop.permute.xlu1 %1208 }
 0x365   : > { %1291 = vst.msk [vmem:[%s2696_s29 + $0x35] sm:$0x1] %vm3901_vm5, %v1209_v57  ;;  %v1211_v8 = vpop.permute.xlu0 %1210 }
 0x366   : > { %1292 = vst.msk [vmem:[%s2696_s29 + $0x39] sm:$0x1] %vm3901_vm5, %v1211_v8 }
 0x368   : > { %v1245_v44 = vpop.permute.xlu1 %1244 }
 0x369   : > { %1309 = vst.msk [vmem:[%s2696_s29 + $0x7d] sm:$0x1] %vm3901_vm5, %v1245_v44  ;;  %v1678_v4 = vpop.permute.xlu0 %1677 }
 0x36a   : > { %1757 = vst.msk [vmem:[%s2696_s29 + $0x42] sm:$0x1] %vm3901_vm5, %v1678_v4 }
 0x36c   : > { %v2139_v51 = vpop.permute.xlu1 %2138 }
 0x36d   : > { %2219 = vst.msk [vmem:[%s2696_s29 + $0x3f] sm:$0x1] %vm3901_vm5, %v2139_v51  ;;  %v1646_v54 = vpop.permute.xlu0 %1645 }
 0x36e   : > { %1741 = vst.msk [vmem:[%s2696_s29 + $0x2] sm:$0x1] %vm3901_vm5, %v1646_v54 }
 0x370   : > { %v1213_v60 = vpop.permute.xlu1 %1212 }
 0x371   : > { %1293 = vst.msk [vmem:[%s2696_s29 + $0x3d] sm:$0x1] %vm3901_vm5, %v1213_v60  ;;  %v1682_v37 = vpop.permute.xlu0 %1681 }
 0x372   : > { %1759 = vst.msk [vmem:[%s2696_s29 + $0x4a] sm:$0x1] %vm3901_vm5, %v1682_v37 }
 0x374   : > { %v1680_v0 = vpop.permute.xlu1 %1679 }
 0x375   : > { %1758 = vst.msk [vmem:[%s2696_s29 + $0x46] sm:$0x1] %vm3901_vm5, %v1680_v0  ;;  %v1686_v61 = vpop.permute.xlu0 %1685 }
 0x376   : > { %1761 = vst.msk [vmem:[%s2696_s29 + $0x52] sm:$0x1] %vm3901_vm5, %v1686_v61 }
 0x378   : > { %v1648_v53 = vpop.permute.xlu1 %1647 }
 0x379   : > { %1742 = vst.msk [vmem:[%s2696_s29 + $0x6] sm:$0x1] %vm3901_vm5, %v1648_v53  ;;  %v1694_v45 = vpop.permute.xlu0 %1693 }
 0x37a   : > { %1765 = vst.msk [vmem:[%s2696_s29 + $0x62] sm:$0x1] %vm3901_vm5, %v1694_v45 }
 0x37c   : > { %v1684_v24 = vpop.permute.xlu1 %1683 }
 0x37d   : > { %1760 = vst.msk [vmem:[%s2696_s29 + $0x4e] sm:$0x1] %vm3901_vm5, %v1684_v24  ;;  %v1650_v11 = vpop.permute.xlu0 %1649 }
 0x37e   : > { %1743 = vst.msk [vmem:[%s2696_s29 + $0xa] sm:$0x1] %vm3901_vm5, %v1650_v11 }
 0x380   : > { %v1688_v20 = vpop.permute.xlu1 %1687 }
 0x381   : > { %1762 = vst.msk [vmem:[%s2696_s29 + $0x56] sm:$0x1] %vm3901_vm5, %v1688_v20  ;;  %v1654_v62 = vpop.permute.xlu0 %1653 }
 0x382   : > { %1745 = vst.msk [vmem:[%s2696_s29 + $0x12] sm:$0x1] %vm3901_vm5, %v1654_v62 }
 0x384   : > { %v1696_v23 = vpop.permute.xlu1 %1695 }
 0x385   : > { %1766 = vst.msk [vmem:[%s2696_s29 + $0x66] sm:$0x1] %vm3901_vm5, %v1696_v23  ;;  %v1662_v2 = vpop.permute.xlu0 %1661 }
 0x386   : > { %1749 = vst.msk [vmem:[%s2696_s29 + $0x22] sm:$0x1] %vm3901_vm5, %v1662_v2 }
 0x388   : > { %v1652_v17 = vpop.permute.xlu1 %1651 }
 0x389   : > { %1744 = vst.msk [vmem:[%s2696_s29 + $0xe] sm:$0x1] %vm3901_vm5, %v1652_v17  ;;  %v1690_v9 = vpop.permute.xlu0 %1689 }
 0x38a   : > { %1763 = vst.msk [vmem:[%s2696_s29 + $0x5a] sm:$0x1] %vm3901_vm5, %v1690_v9 }
 0x38c   : > { %v1656_v5 = vpop.permute.xlu1 %1655 }
 0x38d   : > { %1746 = vst.msk [vmem:[%s2696_s29 + $0x16] sm:$0x1] %vm3901_vm5, %v1656_v5  ;;  %v1698_v29 = vpop.permute.xlu0 %1697 }
 0x38e   : > { %1767 = vst.msk [vmem:[%s2696_s29 + $0x6a] sm:$0x1] %vm3901_vm5, %v1698_v29 }
 0x390   : > { %v1664_v15 = vpop.permute.xlu1 %1663 }
 0x391   : > { %1750 = vst.msk [vmem:[%s2696_s29 + $0x26] sm:$0x1] %vm3901_vm5, %v1664_v15  ;;  %v1702_v19 = vpop.permute.xlu0 %1701 }
 0x392   : > { %1769 = vst.msk [vmem:[%s2696_s29 + $0x72] sm:$0x1] %vm3901_vm5, %v1702_v19 }
 0x394   : > { %v1692_v55 = vpop.permute.xlu1 %1691 }
 0x395   : > { %1764 = vst.msk [vmem:[%s2696_s29 + $0x5e] sm:$0x1] %vm3901_vm5, %v1692_v55  ;;  %v1658_v58 = vpop.permute.xlu0 %1657 }
 0x396   : > { %1747 = vst.msk [vmem:[%s2696_s29 + $0x1a] sm:$0x1] %vm3901_vm5, %v1658_v58 }
 0x398   : > { %v1700_v56 = vpop.permute.xlu1 %1699 }
 0x399   : > { %1768 = vst.msk [vmem:[%s2696_s29 + $0x6e] sm:$0x1] %vm3901_vm5, %v1700_v56  ;;  %v1666_v59 = vpop.permute.xlu0 %1665 }
 0x39a   : > { %1751 = vst.msk [vmem:[%s2696_s29 + $0x2a] sm:$0x1] %vm3901_vm5, %v1666_v59 }
 0x39c   : > { %v1704_v6 = vpop.permute.xlu1 %1703 }
 0x39d   : > { %1770 = vst.msk [vmem:[%s2696_s29 + $0x76] sm:$0x1] %vm3901_vm5, %v1704_v6  ;;  %v1670_v12 = vpop.permute.xlu0 %1669 }
 0x39e   : > { %1753 = vst.msk [vmem:[%s2696_s29 + $0x32] sm:$0x1] %vm3901_vm5, %v1670_v12 }
 0x3a0   : > { %v1660_v21 = vpop.permute.xlu1 %1659 }
 0x3a1   : > { %1748 = vst.msk [vmem:[%s2696_s29 + $0x1e] sm:$0x1] %vm3901_vm5, %v1660_v21  ;;  %v1706_v3 = vpop.permute.xlu0 %1705 }
 0x3a2   : > { %1771 = vst.msk [vmem:[%s2696_s29 + $0x7a] sm:$0x1] %vm3901_vm5, %v1706_v3 }
 0x3a4   : > { %v1668_v1 = vpop.permute.xlu1 %1667 }
 0x3a5   : > { %1752 = vst.msk [vmem:[%s2696_s29 + $0x2e] sm:$0x1] %vm3901_vm5, %v1668_v1  ;;  %v1674_v35 = vpop.permute.xlu0 %1673 }
 0x3a6   : > { %1755 = vst.msk [vmem:[%s2696_s29 + $0x3a] sm:$0x1] %vm3901_vm5, %v1674_v35 }
 0x3a8   : > { %v1672_v34 = vpop.permute.xlu1 %1671 }
 0x3a9   : > { %1754 = vst.msk [vmem:[%s2696_s29 + $0x36] sm:$0x1] %vm3901_vm5, %v1672_v34  ;;  %v2169_v42 = vpop.permute.xlu0 %2168 }
 0x3aa   : > { %2234 = vst.msk [vmem:[%s2696_s29 + $0x7b] sm:$0x1] %vm3901_vm5, %v2169_v42 }
 0x3ac   : > { %v1708_v28 = vpop.permute.xlu1 %1707 }
 0x3ad   : > { %1772 = vst.msk [vmem:[%s2696_s29 + $0x7e] sm:$0x1] %vm3901_vm5, %v1708_v28 }
 0x3b0   : > { %v1676_v10 = vpop.permute.xlu1 %1675 }
 0x3b1   : > { %1756 = vst.msk [vmem:[%s2696_s29 + $0x3e] sm:$0x1] %vm3901_vm5, %v1676_v10 }
 0x3b4   : > { %v2171_v30 = vpop.permute.xlu1 %2170 }
 0x3b5   : > { %2235 = vst.msk [vmem:[%s2696_s29 + $0x7f] sm:$0x1] %vm3901_vm5, %v2171_v30 }
 0x3b6   : > { %2499 = shalt.err (!%p2496_p5)
}
 0x3b7   : > { %s2500_s13 = scalar_lea.hbm %s4433_s8, 2048  ;;  %s2504_s22 = scalar_lea.hbm %s4494_s4, 4096 }
 0x3b8   : > { %p2501_p6 = scmp.ne.s32.totalorder %s4433_s8, %s2500_s13  ;;  %p2505_p10 = scmp.lt.u32.totalorder %s4433_s8, %s4494_s4 }
 0x3b9   : > { %p2506_p11 = scmp.lt.u32.totalorder %s2504_s22, %s2500_s13  ;;  %p2508_p13 = scmp.lt.u32.totalorder %s2500_s13, %s4433_s8 }
 0x3ba   : > { %p2502_p7 = pnand %p2501_p6, %p2635_p4 }
 0x3bb   : > { %p2507_p12 = por %p2506_p11, %p2505_p10 }
 0x3bc   : > { %p2503_p9 = pneg %p2502_p7 }
 0x3bd   : > { %p2509_p0 = por %p2508_p13, %p2507_p12 }
 0x3bf   : > { %p2510_p1 = pnand %p2509_p0, %p2503_p9 }
 0x3c1   : > { %2513 = shalt.err (!%p2510_p1)
}
 0x3c2   : > { %s2569_s30 = smov 4  }
 0x3c3   : > { %2420 = dma.vmem_to_hbm [thread:$0]  (%p2635_p4), %s4435_s5, 2048, %s4433_s8, %s4442_s18, %s2567_s26, %s2567_s26, %s2569_s30  }
 0x3c4 PF: > { %p2426_p2 = scmp.ge.s32.totalorder %s2564_s20, 2  ;;  %s2267_s6 = sand.u32 1, %s2544_s15  }
 0x3c5   : > { %s2268_s7 = scalar_lea.sflag [#allocation3], %s2267_s6 }
 0x3c6   : > { %p2423_p3 = pnand %p2426_p2, %p2642_p8 }
 0x3c8   : > { %2539 = dma.done.wait (!%p2423_p3), %s2268_s7, 2048  }
 0x3c9   : > { %2541 = vsyncadd (!%p2423_p3), %s2268_s7, 4294965248  ;;  %s17_s20 = sadd.s32 1, %s2564_s20   ;;  %s4637_s15 = smov %s2548_s16 }
 0x3ca   : > { %p14_p5 = scmp.ge.s32.totalorder %s17_s20, 4   ;;  %s4638_s16 = smov %s2552_s17 }
 0x3cb   : > { %s4639_s17 = smov %s2648_s28  ;;  %s4640_s18 = smov %s2560_s19 }
 0x3cc   : > { %s4641_s19 = smov %s4643_s23  ;;  %16 = sbr.rel (!%p14_p5) target bundleno = 4 (0x4), region = 71 }
 0x3d3   :  { %2273 = vsyncpa [#allocation3], 1 }
 0x3d4   :  { %2275 = vsyncpa [#allocation3 + $0x1], 1 }

</bundles_post_ra>
